<compile_context>
chip_gen: v7x
topology: tpu7x:2x2x1
jax: 0.10.0
libtpu: 0.0.40
codegen_flags: <defaults>
</compile_context>

<pallas_src>
import functools

import jax
import jax.numpy as jnp
from jax import lax
from jax.experimental import pallas as pl
from jax.experimental.pallas import tpu as pltpu


_VMEM_LIMIT = 32 * 1024 * 1024


def _round_up(v, m):
    return (v + m - 1) // m * m


def _largest_divisor_leq(n, k):
    k = max(1, min(n, int(k)))
    for d in range(k, 0, -1):
        if n % d == 0:
            return d
    return 1


def _pad_axis_to(a, axis, size):
    pad = [(0, 0)] * a.ndim
    pad[axis] = (0, size - a.shape[axis])
    return jnp.pad(a, pad)


# ----------------------------------------------------------------------------
# MaxPool3d(kernel=3, stride=(1,2,2), padding=1)
# ----------------------------------------------------------------------------
def _maxpool_kernel(ee_ref, eo_ref, oe_ref, oo_ref, o_ref):
    # Refs (per (n, d, kd) step): [C, Ho+1, Wo+1] even/odd decimated planes of
    # input depth d+kd-1 (leading row/col is the -inf pool pad). o_ref: [C, Ho, Wo].
    kd = pl.program_id(2)
    _, ho, wo = o_ref.shape
    # window rows are original rows {2oh-1, 2oh, 2oh+1} -> (parity, slice offset)
    rows = (("o", 0), ("e", 1), ("o", 1))
    cols = (("o", 0), ("e", 1), ("o", 1))
    arr = {("e", "e"): ee_ref, ("e", "o"): eo_ref,
           ("o", "e"): oe_ref, ("o", "o"): oo_ref}
    taps = [arr[(rp, cp)][:, ro:ro + ho, co:co + wo]
            for (rp, ro) in rows for (cp, co) in cols]
    # balanced max tree (pure VPU)
    while len(taps) > 1:
        nxt = [jnp.maximum(a, b) for a, b in zip(taps[0::2], taps[1::2])]
        if len(taps) % 2:
            nxt.append(taps[-1])
        taps = nxt
    m = taps[0]

    @pl.when(kd == 0)
    def _():
        o_ref[...] = m

    @pl.when(kd > 0)
    def _():
        o_ref[...] = jnp.maximum(o_ref[...], m)


def maxpool3d_k3_s122_p1(x):
    """x: [N, C, D, H, W] float32 -> pooled [N, D, C, Ho, Wo]."""
    n, c, d, h, w = x.shape
    assert h % 2 == 0 and w % 2 == 0, "even H and W assumed"
    ho, wo = h // 2, w // 2
    xt = jnp.transpose(x, (0, 2, 1, 3, 4))                 # [N, D, C, H, W]
    xr = xt.reshape(n, d, c, ho, 2, wo, 2)
    neg_inf = jnp.asarray(-jnp.inf, jnp.float32)
    # pad: D both sides (stride-1 window), H/W need only a leading pad row/col
    pads = ((0, 0), (1, 1), (0, 0), (1, 0), (1, 0))
    dec = [[None, None], [None, None]]
    for rp in range(2):
        for cp in range(2):
            dec[rp][cp] = jnp.pad(xr[:, :, :, :, rp, :, cp], pads,
                                  constant_values=neg_inf)  # [N, D+2, C, Ho+1, Wo+1]
    ee, eo, oe, oo = dec[0][0], dec[0][1], dec[1][0], dec[1][1]

    in_spec = pl.BlockSpec((None, None, c, ho + 1, wo + 1),
                           lambda nn, dd, kk: (nn, dd + kk, 0, 0, 0))
    out_spec = pl.BlockSpec((None, None, c, ho, wo),
                            lambda nn, dd, kk: (nn, dd, 0, 0, 0))
    return pl.pallas_call(
        _maxpool_kernel,
        out_shape=jax.ShapeDtypeStruct((n, d, c, ho, wo), jnp.float32),
        grid_spec=pltpu.PrefetchScalarGridSpec(
            num_scalar_prefetch=0,
            grid=(n, d, 3),
            in_specs=[in_spec, in_spec, in_spec, in_spec],
            out_specs=out_spec),
        compiler_params=pltpu.CompilerParams(
            dimension_semantics=("parallel", "parallel", "arbitrary"),
            vmem_limit_bytes=_VMEM_LIMIT),
    )(ee, eo, oe, oo)


# ----------------------------------------------------------------------------
# 3x3x3 conv (bias-free) + fused BatchNorm partial statistics
# ----------------------------------------------------------------------------
def _conv_stats_kernel(x0_ref, x1_ref, x2_ref, w_ref, y_ref, st_ref, *, H, W, Wp):
    # x*_ref: [Cin, Lp] zero-padded input plane at depth d+kd, rows flattened
    #         with stride Wp so tap (kh, kw) is the contiguous slice at kh*Wp+kw.
    # w_ref : [27, Cout, Cin]    y_ref: [Cout, Lq]    st_ref: [Cout, 2]
    lq = y_ref.shape[-1]
    cout = y_ref.shape[0]
    planes = (x0_ref, x1_ref, x2_ref)
    acc = jnp.zeros((cout, lq), jnp.float32)
    for kd in range(3):
        xr = planes[kd]
        for kh in range(3):
            for kw in range(3):
                t = kd * 9 + kh * 3 + kw
                off = kh * Wp + kw
                acc = acc + jnp.dot(w_ref[t], xr[:, off:off + lq],
                                    preferred_element_type=jnp.float32)
    y_ref[...] = acc
    # masked partial BN stats: exclude the junk columns of the stride-Wp layout
    q = lax.broadcasted_iota(jnp.int32, (1, lq), 1)
    valid = jnp.logical_and(q % Wp < W, q < H * Wp).astype(jnp.float32)
    am = acc * valid
    st_ref[:, 0:1] = jnp.sum(am, axis=1, keepdims=True)
    st_ref[:, 1:2] = jnp.sum(am * acc, axis=1, keepdims=True)


def conv3x3x3_stats(xp, w_mat, H, W):
    # xp: [N, Dp, Cin, Lp] (zero-padded, flat rows of width Wp=W+2)
    # w_mat: [27, Cout, Cin]
    n, dp, cin, lp = xp.shape
    d = dp - 2
    wp = W + 2
    ntaps, cout, cin_w = w_mat.shape
    assert ntaps == 27 and cin_w == cin
    lq = _round_up(H * wp, 128)
    assert lp >= lq + 2 * wp + 2

    def plane_spec(kd):
        return pl.BlockSpec((None, None, cin, lp),
                            lambda nn, dd: (nn, dd + kd, 0, 0))

    kern = functools.partial(_conv_stats_kernel, H=H, W=W, Wp=wp)
    y, st = pl.pallas_call(
        kern,
        out_shape=(jax.ShapeDtypeStruct((n, d, cout, lq), jnp.float32),
                   jax.ShapeDtypeStruct((n, d, cout, 2), jnp.float32)),
        grid_spec=pltpu.PrefetchScalarGridSpec(
            num_scalar_prefetch=0,
            grid=(n, d),
            in_specs=[plane_spec(0), plane_spec(1), plane_spec(2),
                      pl.BlockSpec((27, cout, cin), lambda nn, dd: (0, 0, 0))],
            out_specs=(pl.BlockSpec((None, None, cout, lq),
                                    lambda nn, dd: (nn, dd, 0, 0)),
                       pl.BlockSpec((None, None, cout, 2),
                                    lambda nn, dd: (nn, dd, 0, 0)))),
        compiler_params=pltpu.CompilerParams(
            dimension_semantics=("parallel", "parallel"),
            vmem_limit_bytes=_VMEM_LIMIT),
    )(xp, xp, xp, w_mat)
    return y, st


# ----------------------------------------------------------------------------
# Fused BN normalize + ReLU (lane-dense), zeroing the layout's junk columns
# ----------------------------------------------------------------------------
def _bn_relu_kernel(y_ref, sc_ref, sh_ref, o_ref, *, H, W, Wp):
    lq = y_ref.shape[-1]
    q = lax.broadcasted_iota(jnp.int32, (1, 1, lq), 2)
    valid = jnp.logical_and(q % Wp < W, q < H * Wp).astype(jnp.float32)
    y = y_ref[...] * sc_ref[...] + sh_ref[...]
    o_ref[...] = jnp.maximum(y, 0.0) * valid


def bn_relu_masked(y, scale, shift, H, W):
    # y: [N, D, Cout, Lq]; scale/shift: [Cout]
    n, d, cout, lq = y.shape
    wp = W + 2
    nd = n * d
    yf = y.reshape(nd, cout, lq)
    bm = _largest_divisor_leq(nd, (1 << 20) // max(1, cout * lq * 4))
    if nd // bm < 2 and nd >= 2:                 # >=2 parallel steps for megacore
        bm = _largest_divisor_leq(nd, nd // 2)
    out = pl.pallas_call(
        functools.partial(_bn_relu_kernel, H=H, W=W, Wp=wp),
        out_shape=jax.ShapeDtypeStruct((nd, cout, lq), jnp.float32),
        grid_spec=pltpu.PrefetchScalarGridSpec(
            num_scalar_prefetch=0,
            grid=(nd // bm,),
            in_specs=[pl.BlockSpec((bm, cout, lq), lambda i: (i, 0, 0)),
                      pl.BlockSpec((1, cout, 1), lambda i: (0, 0, 0)),
                      pl.BlockSpec((1, cout, 1), lambda i: (0, 0, 0))],
            out_specs=pl.BlockSpec((bm, cout, lq), lambda i: (i, 0, 0))),
        compiler_params=pltpu.CompilerParams(
            dimension_semantics=("parallel",),
            vmem_limit_bytes=_VMEM_LIMIT),
    )(yf, scale.reshape(1, cout, 1), shift.reshape(1, cout, 1))
    return out.reshape(n, d, cout, lq)


# ----------------------------------------------------------------------------
# Conv -> BN(training stats) -> ReLU block
# ----------------------------------------------------------------------------
def _conv_bn_relu(xp, w, gamma, beta, H, W, eps=1e-5):
    # xp: [N, Dp, Cin_pad, Lp]; w: [Cout, Cin, 3, 3, 3] (PyTorch layout)
    n, dp, cinp, _ = xp.shape
    d = dp - 2
    cout, cin = w.shape[0], w.shape[1]
    coutp = _round_up(cout, 8)
    w_mat = jnp.transpose(w, (2, 3, 4, 0, 1)).reshape(27, cout, cin)
    w_mat = jnp.pad(w_mat, ((0, 0), (0, coutp - cout), (0, cinp - cin)))
    # NOTE: conv bias is intentionally omitted — it cancels exactly under
    # training-mode BatchNorm (mean subtraction removes it).
    y, st = conv3x3x3_stats(xp, w_mat, H, W)           # y: [N, D, coutp, Lq]
    s = jnp.sum(st, axis=(0, 1))                       # [coutp, 2]
    cnt = jnp.float32(n * d * H * W)
    mean = s[:, 0] / cnt
    var = jnp.maximum(s[:, 1] / cnt - mean * mean, 0.0)
    g = _pad_axis_to(gamma, 0, coutp)
    b = _pad_axis_to(beta, 0, coutp)
    scale = g * lax.rsqrt(var + eps)
    shift = b - mean * scale
    h = bn_relu_masked(y, scale, shift, H, W)          # junk columns zeroed
    return h, cout


# ----------------------------------------------------------------------------
# Down.forward: MaxPool3d((3,3,3), stride=(1,2,2), pad=1) -> DoubleConv
# ----------------------------------------------------------------------------
def down_forward(x_ncdhw, params, eps=1e-5):
    x = x_ncdhw.astype(jnp.float32)
    n, cin, d, h_in, w_in = x.shape
    pooled = maxpool3d_k3_s122_p1(x)                   # [N, D, Cin, Ho, Wo]
    ho, wo = h_in // 2, w_in // 2
    wp = wo + 2
    lq = _round_up(ho * wp, 128)
    lp = _round_up(lq + 2 * wp + 2, 128)

    # conv1 input: zero-pad (D, H, W) by 1, pad channels to a multiple of 8,
    # flatten padded (H, W) into a single lane-major dim, pad to Lp.
    cin_p = _round_up(cin, 8)
    p = _pad_axis_to(pooled, 2, cin_p)
    p = jnp.pad(p, ((0, 0), (1, 1), (0, 0), (1, 1), (1, 1)))
    xp1 = _pad_axis_to(p.reshape(n, d + 2, cin_p, (ho + 2) * wp), 3, lp)

    h1, _ = _conv_bn_relu(xp1, params["w1"], params["g1"], params["be1"],
                          ho, wo, eps)

    # conv2 input: h1 rows already have width Wp with zeroed pad columns, so a
    # flat shift of Wp+1 plus depth padding reproduces the zero-padded planes.
    xp2 = jnp.pad(h1, ((0, 0), (1, 1), (0, 0), (wp + 1, lp - (wp + 1) - lq)))
    h2, cout = _conv_bn_relu(xp2, params["w2"], params["g2"], params["be2"],
                             ho, wo, eps)

    # un-flatten, drop padding/junk, return NCDHW
    out = h2[:, :, :cout, :ho * wp].reshape(n, d, cout, ho, wp)[..., :wo]
    return jnp.transpose(out, (0, 2, 1, 3, 4))


# ----------------------------------------------------------------------------
# Pure-JAX reference (for correctness check only)
# ----------------------------------------------------------------------------
def _reference(x, params, eps=1e-5):
    p = lax.reduce_window(x, -jnp.inf, lax.max,
                          window_dimensions=(1, 1, 3, 3, 3),
                          window_strides=(1, 1, 1, 2, 2),
                          padding=((0, 0), (0, 0), (1, 1), (1, 1), (1, 1)))

    def block(h, w, b, g, be):
        y = lax.conv_general_dilated(
            h, w, window_strides=(1, 1, 1), padding=((1, 1),) * 3,
            dimension_numbers=("NCDHW", "OIDHW", "NCDHW"))
        y = y + b.reshape(1, -1, 1, 1, 1)
        mean = jnp.mean(y, axis=(0, 2, 3, 4), keepdims=True)
        var = jnp.mean((y - mean) ** 2, axis=(0, 2, 3, 4), keepdims=True)
        y = (y - mean) * lax.rsqrt(var + eps)
        y = y * g.reshape(1, -1, 1, 1, 1) + be.reshape(1, -1, 1, 1, 1)
        return jnp.maximum(y, 0.0)

    h = block(p, params["w1"], params["b1"], params["g1"], params["be1"])
    return block(h, params["w2"], params["b2"], params["g2"], params["be2"])


# ----------------------------------------------------------------------------
if __name__ == "__main__":
    N, C_IN, C_OUT, D, H, W = 2, 4, 8, 8, 16, 16

    key = jax.random.PRNGKey(0)
    kx, kw1, kb1, kw2, kb2 = jax.random.split(key, 5)

    x = jax.random.normal(kx, (N, C_IN, D, H, W), dtype=jnp.float32)
    params = {
        # Conv3d(C_IN -> C_OUT, k=3, pad=1); bias kept for reference fidelity
        # but folded away by the kernel path (cancels under training-mode BN).
        "w1": jax.random.normal(kw1, (C_OUT, C_IN, 3, 3, 3), jnp.float32) * 0.1,
        "b1": jax.random.normal(kb1, (C_OUT,), jnp.float32) * 0.1,
        "g1": jnp.ones((C_OUT,), jnp.float32),
        "be1": jnp.zeros((C_OUT,), jnp.float32),
        # Conv3d(C_OUT -> C_OUT, k=3, pad=1)
        "w2": jax.random.normal(kw2, (C_OUT, C_OUT, 3, 3, 3), jnp.float32) * 0.1,
        "b2": jax.random.normal(kb2, (C_OUT,), jnp.float32) * 0.1,
        "g2": jnp.ones((C_OUT,), jnp.float32),
        "be2": jnp.zeros((C_OUT,), jnp.float32),
    }

    out = jax.jit(down_forward)(x, params)
    out = jax.block_until_ready(out)

    assert out.shape == (N, C_OUT, D, H // 2, W // 2), out.shape

    ref = jax.block_until_ready(_reference(x, params))
    err = float(jnp.max(jnp.abs(out - ref)))
    assert jnp.allclose(out, ref, rtol=1e-3, atol=1e-3), err

    print("KERNEL_OK")
</pallas_src>

<mosaic_0001>
module attributes {stable_mosaic.version = 11 : i64} {
  func.func @_maxpool_kernel(%arg0: i32, %arg1: i32, %arg2: i32, %arg3: memref<1x1x4x9x9xf32, #tpu.memory_space<vmem>>, %arg4: memref<1x1x4x9x9xf32, #tpu.memory_space<vmem>>, %arg5: memref<1x1x4x9x9xf32, #tpu.memory_space<vmem>>, %arg6: memref<1x1x4x9x9xf32, #tpu.memory_space<vmem>>, %arg7: memref<1x1x4x8x8xf32, #tpu.memory_space<vmem>>) attributes {dimension_semantics = [#tpu.dimension_semantics<parallel>, #tpu.dimension_semantics<parallel>, #tpu.dimension_semantics<arbitrary>], iteration_bounds = array<i64: 2, 8, 3>, scalar_prefetch = 0 : i64, scratch_operands = 0 : i64, tpu.core_type = #tpu.core_type<tc>, window_params = [{transform_indices = @transform_0, window_bounds = array<i64: 1, 1, 4, 9, 9>}, {transform_indices = @transform_1, window_bounds = array<i64: 1, 1, 4, 9, 9>}, {transform_indices = @transform_2, window_bounds = array<i64: 1, 1, 4, 9, 9>}, {transform_indices = @transform_3, window_bounds = array<i64: 1, 1, 4, 9, 9>}, {transform_indices = @transform_4, window_bounds = array<i64: 1, 1, 4, 8, 8>}]} {
    %c0 = arith.constant 0 : index
    %c0_0 = arith.constant 0 : index
    %c0_1 = arith.constant 0 : index
    %c0_2 = arith.constant 0 : index
    %c0_3 = arith.constant 0 : index
    %0 = vector.load %arg6[%c0, %c0_0, %c0_1, %c0_2, %c0_3] : memref<1x1x4x9x9xf32, #tpu.memory_space<vmem>>, vector<1x1x4x8x8xf32>
    %1 = vector.shape_cast %0 : vector<1x1x4x8x8xf32> to vector<4x8x8xf32>
    %c0_4 = arith.constant 0 : index
    %c0_5 = arith.constant 0 : index
    %c0_6 = arith.constant 0 : index
    %c0_7 = arith.constant 0 : index
    %c1 = arith.constant 1 : index
    %2 = vector.load %arg5[%c0_4, %c0_5, %c0_6, %c0_7, %c1] : memref<1x1x4x9x9xf32, #tpu.memory_space<vmem>>, vector<1x1x4x8x8xf32>
    %3 = vector.shape_cast %2 : vector<1x1x4x8x8xf32> to vector<4x8x8xf32>
    %c0_8 = arith.constant 0 : index
    %c0_9 = arith.constant 0 : index
    %c0_10 = arith.constant 0 : index
    %c0_11 = arith.constant 0 : index
    %c1_12 = arith.constant 1 : index
    %4 = vector.load %arg6[%c0_8, %c0_9, %c0_10, %c0_11, %c1_12] : memref<1x1x4x9x9xf32, #tpu.memory_space<vmem>>, vector<1x1x4x8x8xf32>
    %5 = vector.shape_cast %4 : vector<1x1x4x8x8xf32> to vector<4x8x8xf32>
    %c0_13 = arith.constant 0 : index
    %c0_14 = arith.constant 0 : index
    %c0_15 = arith.constant 0 : index
    %c1_16 = arith.constant 1 : index
    %c0_17 = arith.constant 0 : index
    %6 = vector.load %arg4[%c0_13, %c0_14, %c0_15, %c1_16, %c0_17] : memref<1x1x4x9x9xf32, #tpu.memory_space<vmem>>, vector<1x1x4x8x8xf32>
    %7 = vector.shape_cast %6 : vector<1x1x4x8x8xf32> to vector<4x8x8xf32>
    %c0_18 = arith.constant 0 : index
    %c0_19 = arith.constant 0 : index
    %c0_20 = arith.constant 0 : index
    %c1_21 = arith.constant 1 : index
    %c1_22 = arith.constant 1 : index
    %8 = vector.load %arg3[%c0_18, %c0_19, %c0_20, %c1_21, %c1_22] : memref<1x1x4x9x9xf32, #tpu.memory_space<vmem>>, vector<1x1x4x8x8xf32>
    %9 = vector.shape_cast %8 : vector<1x1x4x8x8xf32> to vector<4x8x8xf32>
    %c0_23 = arith.constant 0 : index
    %c0_24 = arith.constant 0 : index
    %c0_25 = arith.constant 0 : index
    %c1_26 = arith.constant 1 : index
    %c1_27 = arith.constant 1 : index
    %10 = vector.load %arg4[%c0_23, %c0_24, %c0_25, %c1_26, %c1_27] : memref<1x1x4x9x9xf32, #tpu.memory_space<vmem>>, vector<1x1x4x8x8xf32>
    %11 = vector.shape_cast %10 : vector<1x1x4x8x8xf32> to vector<4x8x8xf32>
    %c0_28 = arith.constant 0 : index
    %c0_29 = arith.constant 0 : index
    %c0_30 = arith.constant 0 : index
    %c1_31 = arith.constant 1 : index
    %c0_32 = arith.constant 0 : index
    %12 = vector.load %arg6[%c0_28, %c0_29, %c0_30, %c1_31, %c0_32] : memref<1x1x4x9x9xf32, #tpu.memory_space<vmem>>, vector<1x1x4x8x8xf32>
    %13 = vector.shape_cast %12 : vector<1x1x4x8x8xf32> to vector<4x8x8xf32>
    %c0_33 = arith.constant 0 : index
    %c0_34 = arith.constant 0 : index
    %c0_35 = arith.constant 0 : index
    %c1_36 = arith.constant 1 : index
    %c1_37 = arith.constant 1 : index
    %14 = vector.load %arg5[%c0_33, %c0_34, %c0_35, %c1_36, %c1_37] : memref<1x1x4x9x9xf32, #tpu.memory_space<vmem>>, vector<1x1x4x8x8xf32>
    %15 = vector.shape_cast %14 : vector<1x1x4x8x8xf32> to vector<4x8x8xf32>
    %c0_38 = arith.constant 0 : index
    %c0_39 = arith.constant 0 : index
    %c0_40 = arith.constant 0 : index
    %c1_41 = arith.constant 1 : index
    %c1_42 = arith.constant 1 : index
    %16 = vector.load %arg6[%c0_38, %c0_39, %c0_40, %c1_41, %c1_42] : memref<1x1x4x9x9xf32, #tpu.memory_space<vmem>>, vector<1x1x4x8x8xf32>
    %17 = vector.shape_cast %16 : vector<1x1x4x8x8xf32> to vector<4x8x8xf32>
    %18 = arith.maximumf %1, %3 : vector<4x8x8xf32>
    %19 = arith.maximumf %5, %7 : vector<4x8x8xf32>
    %20 = arith.maximumf %9, %11 : vector<4x8x8xf32>
    %21 = arith.maximumf %13, %15 : vector<4x8x8xf32>
    %22 = arith.maximumf %18, %19 : vector<4x8x8xf32>
    %23 = arith.maximumf %20, %21 : vector<4x8x8xf32>
    %24 = arith.maximumf %22, %23 : vector<4x8x8xf32>
    %25 = arith.maximumf %24, %17 : vector<4x8x8xf32>
    %c0_i32 = arith.constant 0 : i32
    %26 = arith.cmpi eq, %arg2, %c0_i32 : i32
    %27 = arith.extui %26 : i1 to i32
    %c0_i32_43 = arith.constant 0 : i32
    %28 = arith.cmpi ne, %27, %c0_i32_43 : i32
    scf.if %28 {
      %c0_46 = arith.constant 0 : index
      %c0_47 = arith.constant 0 : index
      %c0_48 = arith.constant 0 : index
      %c0_49 = arith.constant 0 : index
      %c0_50 = arith.constant 0 : index
      %32 = vector.load %arg7[%c0_46, %c0_47, %c0_48, %c0_49, %c0_50] : memref<1x1x4x8x8xf32, #tpu.memory_space<vmem>>, vector<1x1x4x8x8xf32>
      %33 = vector.shape_cast %32 : vector<1x1x4x8x8xf32> to vector<4x8x8xf32>
      %34 = vector.shape_cast %25 : vector<4x8x8xf32> to vector<1x1x4x8x8xf32>
      tpu.vector_store %arg7[%c0_46, %c0_47, %c0_48, %c0_49, %c0_50], %34 {strides = array<i32>} : memref<1x1x4x8x8xf32, #tpu.memory_space<vmem>>, vector<1x1x4x8x8xf32>,
    } else {
    }
    %c0_i32_44 = arith.constant 0 : i32
    %29 = arith.cmpi sgt, %arg2, %c0_i32_44 : i32
    %30 = arith.extui %29 : i1 to i32
    %c0_i32_45 = arith.constant 0 : i32
    %31 = arith.cmpi ne, %30, %c0_i32_45 : i32
    scf.if %31 {
      %c0_46 = arith.constant 0 : index
      %c0_47 = arith.constant 0 : index
      %c0_48 = arith.constant 0 : index
      %c0_49 = arith.constant 0 : index
      %c0_50 = arith.constant 0 : index
      %32 = vector.load %arg7[%c0_46, %c0_47, %c0_48, %c0_49, %c0_50] : memref<1x1x4x8x8xf32, #tpu.memory_space<vmem>>, vector<1x1x4x8x8xf32>
      %33 = vector.shape_cast %32 : vector<1x1x4x8x8xf32> to vector<4x8x8xf32>
      %34 = arith.maximumf %33, %25 : vector<4x8x8xf32>
      %c0_51 = arith.constant 0 : index
      %c0_52 = arith.constant 0 : index
      %c0_53 = arith.constant 0 : index
      %c0_54 = arith.constant 0 : index
      %c0_55 = arith.constant 0 : index
      %35 = vector.load %arg7[%c0_51, %c0_52, %c0_53, %c0_54, %c0_55] : memref<1x1x4x8x8xf32, #tpu.memory_space<vmem>>, vector<1x1x4x8x8xf32>
      %36 = vector.shape_cast %35 : vector<1x1x4x8x8xf32> to vector<4x8x8xf32>
      %37 = vector.shape_cast %34 : vector<4x8x8xf32> to vector<1x1x4x8x8xf32>
      tpu.vector_store %arg7[%c0_51, %c0_52, %c0_53, %c0_54, %c0_55], %37 {strides = array<i32>} : memref<1x1x4x8x8xf32, #tpu.memory_space<vmem>>, vector<1x1x4x8x8xf32>,
    } else {
    }
    return
  }
  func.func @transform_0(%arg0: i32, %arg1: i32, %arg2: i32) -> (i32, i32, i32, i32, i32) {
    %0 = arith.addi %arg1, %arg2 : i32
    %c0_i32 = arith.constant 0 : i32
    %c0_i32_0 = arith.constant 0 : i32
    %c0_i32_1 = arith.constant 0 : i32
    %c0_i32_2 = arith.constant 0 : i32
    return %arg0, %0, %c0_i32, %c0_i32_0, %c0_i32_1 : i32, i32, i32, i32, i32
  }
  func.func @transform_1(%arg0: i32, %arg1: i32, %arg2: i32) -> (i32, i32, i32, i32, i32) {
    %0 = arith.addi %arg1, %arg2 : i32
    %c0_i32 = arith.constant 0 : i32
    %c0_i32_0 = arith.constant 0 : i32
    %c0_i32_1 = arith.constant 0 : i32
    %c0_i32_2 = arith.constant 0 : i32
    return %arg0, %0, %c0_i32, %c0_i32_0, %c0_i32_1 : i32, i32, i32, i32, i32
  }
  func.func @transform_2(%arg0: i32, %arg1: i32, %arg2: i32) -> (i32, i32, i32, i32, i32) {
    %0 = arith.addi %arg1, %arg2 : i32
    %c0_i32 = arith.constant 0 : i32
    %c0_i32_0 = arith.constant 0 : i32
    %c0_i32_1 = arith.constant 0 : i32
    %c0_i32_2 = arith.constant 0 : i32
    return %arg0, %0, %c0_i32, %c0_i32_0, %c0_i32_1 : i32, i32, i32, i32, i32
  }
  func.func @transform_3(%arg0: i32, %arg1: i32, %arg2: i32) -> (i32, i32, i32, i32, i32) {
    %0 = arith.addi %arg1, %arg2 : i32
    %c0_i32 = arith.constant 0 : i32
    %c0_i32_0 = arith.constant 0 : i32
    %c0_i32_1 = arith.constant 0 : i32
    %c0_i32_2 = arith.constant 0 : i32
    return %arg0, %0, %c0_i32, %c0_i32_0, %c0_i32_1 : i32, i32, i32, i32, i32
  }
  func.func @transform_4(%arg0: i32, %arg1: i32, %arg2: i32) -> (i32, i32, i32, i32, i32) {
    %c0_i32 = arith.constant 0 : i32
    %c0_i32_0 = arith.constant 0 : i32
    %c0_i32_1 = arith.constant 0 : i32
    %c0_i32_2 = arith.constant 0 : i32
    return %arg0, %arg1, %c0_i32, %c0_i32_0, %c0_i32_1 : i32, i32, i32, i32, i32
  }
}

module attributes {stable_mosaic.version = 11 : i64} {
  func.func @_conv_stats_kernel(%arg0: i32, %arg1: i32, %arg2: memref<1x1x8x256xf32, #tpu.memory_space<vmem>>, %arg3: memref<1x1x8x256xf32, #tpu.memory_space<vmem>>, %arg4: memref<1x1x8x256xf32, #tpu.memory_space<vmem>>, %arg5: memref<27x8x8xf32, #tpu.memory_space<vmem>>, %arg6: memref<1x1x8x128xf32, #tpu.memory_space<vmem>>, %arg7: memref<1x1x8x2xf32, #tpu.memory_space<vmem>>) attributes {dimension_semantics = [#tpu.dimension_semantics<parallel>, #tpu.dimension_semantics<parallel>], iteration_bounds = array<i64: 2, 8>, scalar_prefetch = 0 : i64, scratch_operands = 0 : i64, tpu.core_type = #tpu.core_type<tc>, window_params = [{transform_indices = @transform_0, window_bounds = array<i64: 1, 1, 8, 256>}, {transform_indices = @transform_1, window_bounds = array<i64: 1, 1, 8, 256>}, {transform_indices = @transform_2, window_bounds = array<i64: 1, 1, 8, 256>}, {pipeline_mode = #tpu.pipeline_mode<synchronous>, transform_indices = @transform_3, window_bounds = array<i64: 27, 8, 8>}, {transform_indices = @transform_4, window_bounds = array<i64: 1, 1, 8, 128>}, {transform_indices = @transform_5, window_bounds = array<i64: 1, 1, 8, 2>}]} {
    %cst = arith.constant 0.000000e+00 : f32
    %0 = vector.broadcast %cst : f32 to vector<8x128xf32>
    %c0 = arith.constant 0 : index
    %c0_0 = arith.constant 0 : index
    %c0_1 = arith.constant 0 : index
    %1 = vector.load %arg5[%c0, %c0_0, %c0_1] : memref<27x8x8xf32, #tpu.memory_space<vmem>>, vector<1x8x8xf32>
    %2 = vector.shape_cast %1 : vector<1x8x8xf32> to vector<8x8xf32>
    %c0_2 = arith.constant 0 : index
    %c0_3 = arith.constant 0 : index
    %c0_4 = arith.constant 0 : index
    %c0_5 = arith.constant 0 : index
    %3 = vector.load %arg2[%c0_2, %c0_3, %c0_4, %c0_5] : memref<1x1x8x256xf32, #tpu.memory_space<vmem>>, vector<1x1x8x128xf32>
    %4 = vector.shape_cast %3 : vector<1x1x8x128xf32> to vector<8x128xf32>
    %cst_6 = arith.constant dense<0.000000e+00> : vector<8x128xf32>
    %5 = tpu.matmul %2, %4, %cst_6 {dimension_numbers = #tpu.dot_dimension_numbers<[1], [0], [0], [1], [0, 0, 1, 1], [], []>} : vector<8x8xf32>, vector<8x128xf32>, vector<8x128xf32> -> vector<8x128xf32>
    %6 = arith.addf %0, %5 : vector<8x128xf32>
    %c1 = arith.constant 1 : index
    %c0_7 = arith.constant 0 : index
    %c0_8 = arith.constant 0 : index
    %7 = vector.load %arg5[%c1, %c0_7, %c0_8] : memref<27x8x8xf32, #tpu.memory_space<vmem>>, vector<1x8x8xf32>
    %8 = vector.shape_cast %7 : vector<1x8x8xf32> to vector<8x8xf32>
    %c0_9 = arith.constant 0 : index
    %c0_10 = arith.constant 0 : index
    %c0_11 = arith.constant 0 : index
    %c1_12 = arith.constant 1 : index
    %9 = vector.load %arg2[%c0_9, %c0_10, %c0_11, %c1_12] : memref<1x1x8x256xf32, #tpu.memory_space<vmem>>, vector<1x1x8x128xf32>
    %10 = vector.shape_cast %9 : vector<1x1x8x128xf32> to vector<8x128xf32>
    %cst_13 = arith.constant dense<0.000000e+00> : vector<8x128xf32>
    %11 = tpu.matmul %8, %10, %cst_13 {dimension_numbers = #tpu.dot_dimension_numbers<[1], [0], [0], [1], [0, 0, 1, 1], [], []>} : vector<8x8xf32>, vector<8x128xf32>, vector<8x128xf32> -> vector<8x128xf32>
    %12 = arith.addf %6, %11 : vector<8x128xf32>
    %c2 = arith.constant 2 : index
    %c0_14 = arith.constant 0 : index
    %c0_15 = arith.constant 0 : index
    %13 = vector.load %arg5[%c2, %c0_14, %c0_15] : memref<27x8x8xf32, #tpu.memory_space<vmem>>, vector<1x8x8xf32>
    %14 = vector.shape_cast %13 : vector<1x8x8xf32> to vector<8x8xf32>
    %c0_16 = arith.constant 0 : index
    %c0_17 = arith.constant 0 : index
    %c0_18 = arith.constant 0 : index
    %c2_19 = arith.constant 2 : index
    %15 = vector.load %arg2[%c0_16, %c0_17, %c0_18, %c2_19] : memref<1x1x8x256xf32, #tpu.memory_space<vmem>>, vector<1x1x8x128xf32>
    %16 = vector.shape_cast %15 : vector<1x1x8x128xf32> to vector<8x128xf32>
    %cst_20 = arith.constant dense<0.000000e+00> : vector<8x128xf32>
    %17 = tpu.matmul %14, %16, %cst_20 {dimension_numbers = #tpu.dot_dimension_numbers<[1], [0], [0], [1], [0, 0, 1, 1], [], []>} : vector<8x8xf32>, vector<8x128xf32>, vector<8x128xf32> -> vector<8x128xf32>
    %18 = arith.addf %12, %17 : vector<8x128xf32>
    %c3 = arith.constant 3 : index
    %c0_21 = arith.constant 0 : index
    %c0_22 = arith.constant 0 : index
    %19 = vector.load %arg5[%c3, %c0_21, %c0_22] : memref<27x8x8xf32, #tpu.memory_space<vmem>>, vector<1x8x8xf32>
    %20 = vector.shape_cast %19 : vector<1x8x8xf32> to vector<8x8xf32>
    %c0_23 = arith.constant 0 : index
    %c0_24 = arith.constant 0 : index
    %c0_25 = arith.constant 0 : index
    %c10 = arith.constant 10 : index
    %21 = vector.load %arg2[%c0_23, %c0_24, %c0_25, %c10] : memref<1x1x8x256xf32, #tpu.memory_space<vmem>>, vector<1x1x8x128xf32>
    %22 = vector.shape_cast %21 : vector<1x1x8x128xf32> to vector<8x128xf32>
    %cst_26 = arith.constant dense<0.000000e+00> : vector<8x128xf32>
    %23 = tpu.matmul %20, %22, %cst_26 {dimension_numbers = #tpu.dot_dimension_numbers<[1], [0], [0], [1], [0, 0, 1, 1], [], []>} : vector<8x8xf32>, vector<8x128xf32>, vector<8x128xf32> -> vector<8x128xf32>
    %24 = arith.addf %18, %23 : vector<8x128xf32>
    %c4 = arith.constant 4 : index
    %c0_27 = arith.constant 0 : index
    %c0_28 = arith.constant 0 : index
    %25 = vector.load %arg5[%c4, %c0_27, %c0_28] : memref<27x8x8xf32, #tpu.memory_space<vmem>>, vector<1x8x8xf32>
    %26 = vector.shape_cast %25 : vector<1x8x8xf32> to vector<8x8xf32>
    %c0_29 = arith.constant 0 : index
    %c0_30 = arith.constant 0 : index
    %c0_31 = arith.constant 0 : index
    %c11 = arith.constant 11 : index
    %27 = vector.load %arg2[%c0_29, %c0_30, %c0_31, %c11] : memref<1x1x8x256xf32, #tpu.memory_space<vmem>>, vector<1x1x8x128xf32>
    %28 = vector.shape_cast %27 : vector<1x1x8x128xf32> to vector<8x128xf32>
    %cst_32 = arith.constant dense<0.000000e+00> : vector<8x128xf32>
    %29 = tpu.matmul %26, %28, %cst_32 {dimension_numbers = #tpu.dot_dimension_numbers<[1], [0], [0], [1], [0, 0, 1, 1], [], []>} : vector<8x8xf32>, vector<8x128xf32>, vector<8x128xf32> -> vector<8x128xf32>
    %30 = arith.addf %24, %29 : vector<8x128xf32>
    %c5 = arith.constant 5 : index
    %c0_33 = arith.constant 0 : index
    %c0_34 = arith.constant 0 : index
    %31 = vector.load %arg5[%c5, %c0_33, %c0_34] : memref<27x8x8xf32, #tpu.memory_space<vmem>>, vector<1x8x8xf32>
    %32 = vector.shape_cast %31 : vector<1x8x8xf32> to vector<8x8xf32>
    %c0_35 = arith.constant 0 : index
    %c0_36 = arith.constant 0 : index
    %c0_37 = arith.constant 0 : index
    %c12 = arith.constant 12 : index
    %33 = vector.load %arg2[%c0_35, %c0_36, %c0_37, %c12] : memref<1x1x8x256xf32, #tpu.memory_space<vmem>>, vector<1x1x8x128xf32>
    %34 = vector.shape_cast %33 : vector<1x1x8x128xf32> to vector<8x128xf32>
    %cst_38 = arith.constant dense<0.000000e+00> : vector<8x128xf32>
    %35 = tpu.matmul %32, %34, %cst_38 {dimension_numbers = #tpu.dot_dimension_numbers<[1], [0], [0], [1], [0, 0, 1, 1], [], []>} : vector<8x8xf32>, vector<8x128xf32>, vector<8x128xf32> -> vector<8x128xf32>
    %36 = arith.addf %30, %35 : vector<8x128xf32>
    %c6 = arith.constant 6 : index
    %c0_39 = arith.constant 0 : index
    %c0_40 = arith.constant 0 : index
    %37 = vector.load %arg5[%c6, %c0_39, %c0_40] : memref<27x8x8xf32, #tpu.memory_space<vmem>>, vector<1x8x8xf32>
    %38 = vector.shape_cast %37 : vector<1x8x8xf32> to vector<8x8xf32>
    %c0_41 = arith.constant 0 : index
    %c0_42 = arith.constant 0 : index
    %c0_43 = arith.constant 0 : index
    %c20 = arith.constant 20 : index
    %39 = vector.load %arg2[%c0_41, %c0_42, %c0_43, %c20] : memref<1x1x8x256xf32, #tpu.memory_space<vmem>>, vector<1x1x8x128xf32>
    %40 = vector.shape_cast %39 : vector<1x1x8x128xf32> to vector<8x128xf32>
    %cst_44 = arith.constant dense<0.000000e+00> : vector<8x128xf32>
    %41 = tpu.matmul %38, %40, %cst_44 {dimension_numbers = #tpu.dot_dimension_numbers<[1], [0], [0], [1], [0, 0, 1, 1], [], []>} : vector<8x8xf32>, vector<8x128xf32>, vector<8x128xf32> -> vector<8x128xf32>
    %42 = arith.addf %36, %41 : vector<8x128xf32>
    %c7 = arith.constant 7 : index
    %c0_45 = arith.constant 0 : index
    %c0_46 = arith.constant 0 : index
    %43 = vector.load %arg5[%c7, %c0_45, %c0_46] : memref<27x8x8xf32, #tpu.memory_space<vmem>>, vector<1x8x8xf32>
    %44 = vector.shape_cast %43 : vector<1x8x8xf32> to vector<8x8xf32>
    %c0_47 = arith.constant 0 : index
    %c0_48 = arith.constant 0 : index
    %c0_49 = arith.constant 0 : index
    %c21 = arith.constant 21 : index
    %45 = vector.load %arg2[%c0_47, %c0_48, %c0_49, %c21] : memref<1x1x8x256xf32, #tpu.memory_space<vmem>>, vector<1x1x8x128xf32>
    %46 = vector.shape_cast %45 : vector<1x1x8x128xf32> to vector<8x128xf32>
    %cst_50 = arith.constant dense<0.000000e+00> : vector<8x128xf32>
    %47 = tpu.matmul %44, %46, %cst_50 {dimension_numbers = #tpu.dot_dimension_numbers<[1], [0], [0], [1], [0, 0, 1, 1], [], []>} : vector<8x8xf32>, vector<8x128xf32>, vector<8x128xf32> -> vector<8x128xf32>
    %48 = arith.addf %42, %47 : vector<8x128xf32>
    %c8 = arith.constant 8 : index
    %c0_51 = arith.constant 0 : index
    %c0_52 = arith.constant 0 : index
    %49 = vector.load %arg5[%c8, %c0_51, %c0_52] : memref<27x8x8xf32, #tpu.memory_space<vmem>>, vector<1x8x8xf32>
    %50 = vector.shape_cast %49 : vector<1x8x8xf32> to vector<8x8xf32>
    %c0_53 = arith.constant 0 : index
    %c0_54 = arith.constant 0 : index
    %c0_55 = arith.constant 0 : index
    %c22 = arith.constant 22 : index
    %51 = vector.load %arg2[%c0_53, %c0_54, %c0_55, %c22] : memref<1x1x8x256xf32, #tpu.memory_space<vmem>>, vector<1x1x8x128xf32>
    %52 = vector.shape_cast %51 : vector<1x1x8x128xf32> to vector<8x128xf32>
    %cst_56 = arith.constant dense<0.000000e+00> : vector<8x128xf32>
    %53 = tpu.matmul %50, %52, %cst_56 {dimension_numbers = #tpu.dot_dimension_numbers<[1], [0], [0], [1], [0, 0, 1, 1], [], []>} : vector<8x8xf32>, vector<8x128xf32>, vector<8x128xf32> -> vector<8x128xf32>
    %54 = arith.addf %48, %53 : vector<8x128xf32>
    %c9 = arith.constant 9 : index
    %c0_57 = arith.constant 0 : index
    %c0_58 = arith.constant 0 : index
    %55 = vector.load %arg5[%c9, %c0_57, %c0_58] : memref<27x8x8xf32, #tpu.memory_space<vmem>>, vector<1x8x8xf32>
    %56 = vector.shape_cast %55 : vector<1x8x8xf32> to vector<8x8xf32>
    %c0_59 = arith.constant 0 : index
    %c0_60 = arith.constant 0 : index
    %c0_61 = arith.constant 0 : index
    %c0_62 = arith.constant 0 : index
    %57 = vector.load %arg3[%c0_59, %c0_60, %c0_61, %c0_62] : memref<1x1x8x256xf32, #tpu.memory_space<vmem>>, vector<1x1x8x128xf32>
    %58 = vector.shape_cast %57 : vector<1x1x8x128xf32> to vector<8x128xf32>
    %cst_63 = arith.constant dense<0.000000e+00> : vector<8x128xf32>
    %59 = tpu.matmul %56, %58, %cst_63 {dimension_numbers = #tpu.dot_dimension_numbers<[1], [0], [0], [1], [0, 0, 1, 1], [], []>} : vector<8x8xf32>, vector<8x128xf32>, vector<8x128xf32> -> vector<8x128xf32>
    %60 = arith.addf %54, %59 : vector<8x128xf32>
    %c10_64 = arith.constant 10 : index
    %c0_65 = arith.constant 0 : index
    %c0_66 = arith.constant 0 : index
    %61 = vector.load %arg5[%c10_64, %c0_65, %c0_66] : memref<27x8x8xf32, #tpu.memory_space<vmem>>, vector<1x8x8xf32>
    %62 = vector.shape_cast %61 : vector<1x8x8xf32> to vector<8x8xf32>
    %c0_67 = arith.constant 0 : index
    %c0_68 = arith.constant 0 : index
    %c0_69 = arith.constant 0 : index
    %c1_70 = arith.constant 1 : index
    %63 = vector.load %arg3[%c0_67, %c0_68, %c0_69, %c1_70] : memref<1x1x8x256xf32, #tpu.memory_space<vmem>>, vector<1x1x8x128xf32>
    %64 = vector.shape_cast %63 : vector<1x1x8x128xf32> to vector<8x128xf32>
    %cst_71 = arith.constant dense<0.000000e+00> : vector<8x128xf32>
    %65 = tpu.matmul %62, %64, %cst_71 {dimension_numbers = #tpu.dot_dimension_numbers<[1], [0], [0], [1], [0, 0, 1, 1], [], []>} : vector<8x8xf32>, vector<8x128xf32>, vector<8x128xf32> -> vector<8x128xf32>
    %66 = arith.addf %60, %65 : vector<8x128xf32>
    %c11_72 = arith.constant 11 : index
    %c0_73 = arith.constant 0 : index
    %c0_74 = arith.constant 0 : index
    %67 = vector.load %arg5[%c11_72, %c0_73, %c0_74] : memref<27x8x8xf32, #tpu.memory_space<vmem>>, vector<1x8x8xf32>
    %68 = vector.shape_cast %67 : vector<1x8x8xf32> to vector<8x8xf32>
    %c0_75 = arith.constant 0 : index
    %c0_76 = arith.constant 0 : index
    %c0_77 = arith.constant 0 : index
    %c2_78 = arith.constant 2 : index
    %69 = vector.load %arg3[%c0_75, %c0_76, %c0_77, %c2_78] : memref<1x1x8x256xf32, #tpu.memory_space<vmem>>, vector<1x1x8x128xf32>
    %70 = vector.shape_cast %69 : vector<1x1x8x128xf32> to vector<8x128xf32>
    %cst_79 = arith.constant dense<0.000000e+00> : vector<8x128xf32>
    %71 = tpu.matmul %68, %70, %cst_79 {dimension_numbers = #tpu.dot_dimension_numbers<[1], [0], [0], [1], [0, 0, 1, 1], [], []>} : vector<8x8xf32>, vector<8x128xf32>, vector<8x128xf32> -> vector<8x128xf32>
    %72 = arith.addf %66, %71 : vector<8x128xf32>
    %c12_80 = arith.constant 12 : index
    %c0_81 = arith.constant 0 : index
    %c0_82 = arith.constant 0 : index
    %73 = vector.load %arg5[%c12_80, %c0_81, %c0_82] : memref<27x8x8xf32, #tpu.memory_space<vmem>>, vector<1x8x8xf32>
    %74 = vector.shape_cast %73 : vector<1x8x8xf32> to vector<8x8xf32>
    %c0_83 = arith.constant 0 : index
    %c0_84 = arith.constant 0 : index
    %c0_85 = arith.constant 0 : index
    %c10_86 = arith.constant 10 : index
    %75 = vector.load %arg3[%c0_83, %c0_84, %c0_85, %c10_86] : memref<1x1x8x256xf32, #tpu.memory_space<vmem>>, vector<1x1x8x128xf32>
    %76 = vector.shape_cast %75 : vector<1x1x8x128xf32> to vector<8x128xf32>
    %cst_87 = arith.constant dense<0.000000e+00> : vector<8x128xf32>
    %77 = tpu.matmul %74, %76, %cst_87 {dimension_numbers = #tpu.dot_dimension_numbers<[1], [0], [0], [1], [0, 0, 1, 1], [], []>} : vector<8x8xf32>, vector<8x128xf32>, vector<8x128xf32> -> vector<8x128xf32>
    %78 = arith.addf %72, %77 : vector<8x128xf32>
    %c13 = arith.constant 13 : index
    %c0_88 = arith.constant 0 : index
    %c0_89 = arith.constant 0 : index
    %79 = vector.load %arg5[%c13, %c0_88, %c0_89] : memref<27x8x8xf32, #tpu.memory_space<vmem>>, vector<1x8x8xf32>
    %80 = vector.shape_cast %79 : vector<1x8x8xf32> to vector<8x8xf32>
    %c0_90 = arith.constant 0 : index
    %c0_91 = arith.constant 0 : index
    %c0_92 = arith.constant 0 : index
    %c11_93 = arith.constant 11 : index
    %81 = vector.load %arg3[%c0_90, %c0_91, %c0_92, %c11_93] : memref<1x1x8x256xf32, #tpu.memory_space<vmem>>, vector<1x1x8x128xf32>
    %82 = vector.shape_cast %81 : vector<1x1x8x128xf32> to vector<8x128xf32>
    %cst_94 = arith.constant dense<0.000000e+00> : vector<8x128xf32>
    %83 = tpu.matmul %80, %82, %cst_94 {dimension_numbers = #tpu.dot_dimension_numbers<[1], [0], [0], [1], [0, 0, 1, 1], [], []>} : vector<8x8xf32>, vector<8x128xf32>, vector<8x128xf32> -> vector<8x128xf32>
    %84 = arith.addf %78, %83 : vector<8x128xf32>
    %c14 = arith.constant 14 : index
    %c0_95 = arith.constant 0 : index
    %c0_96 = arith.constant 0 : index
    %85 = vector.load %arg5[%c14, %c0_95, %c0_96] : memref<27x8x8xf32, #tpu.memory_space<vmem>>, vector<1x8x8xf32>
    %86 = vector.shape_cast %85 : vector<1x8x8xf32> to vector<8x8xf32>
    %c0_97 = arith.constant 0 : index
    %c0_98 = arith.constant 0 : index
    %c0_99 = arith.constant 0 : index
    %c12_100 = arith.constant 12 : index
    %87 = vector.load %arg3[%c0_97, %c0_98, %c0_99, %c12_100] : memref<1x1x8x256xf32, #tpu.memory_space<vmem>>, vector<1x1x8x128xf32>
    %88 = vector.shape_cast %87 : vector<1x1x8x128xf32> to vector<8x128xf32>
    %cst_101 = arith.constant dense<0.000000e+00> : vector<8x128xf32>
    %89 = tpu.matmul %86, %88, %cst_101 {dimension_numbers = #tpu.dot_dimension_numbers<[1], [0], [0], [1], [0, 0, 1, 1], [], []>} : vector<8x8xf32>, vector<8x128xf32>, vector<8x128xf32> -> vector<8x128xf32>
    %90 = arith.addf %84, %89 : vector<8x128xf32>
    %c15 = arith.constant 15 : index
    %c0_102 = arith.constant 0 : index
    %c0_103 = arith.constant 0 : index
    %91 = vector.load %arg5[%c15, %c0_102, %c0_103] : memref<27x8x8xf32, #tpu.memory_space<vmem>>, vector<1x8x8xf32>
    %92 = vector.shape_cast %91 : vector<1x8x8xf32> to vector<8x8xf32>
    %c0_104 = arith.constant 0 : index
    %c0_105 = arith.constant 0 : index
    %c0_106 = arith.constant 0 : index
    %c20_107 = arith.constant 20 : index
    %93 = vector.load %arg3[%c0_104, %c0_105, %c0_106, %c20_107] : memref<1x1x8x256xf32, #tpu.memory_space<vmem>>, vector<1x1x8x128xf32>
    %94 = vector.shape_cast %93 : vector<1x1x8x128xf32> to vector<8x128xf32>
    %cst_108 = arith.constant dense<0.000000e+00> : vector<8x128xf32>
    %95 = tpu.matmul %92, %94, %cst_108 {dimension_numbers = #tpu.dot_dimension_numbers<[1], [0], [0], [1], [0, 0, 1, 1], [], []>} : vector<8x8xf32>, vector<8x128xf32>, vector<8x128xf32> -> vector<8x128xf32>
    %96 = arith.addf %90, %95 : vector<8x128xf32>
    %c16 = arith.constant 16 : index
    %c0_109 = arith.constant 0 : index
    %c0_110 = arith.constant 0 : index
    %97 = vector.load %arg5[%c16, %c0_109, %c0_110] : memref<27x8x8xf32, #tpu.memory_space<vmem>>, vector<1x8x8xf32>
    %98 = vector.shape_cast %97 : vector<1x8x8xf32> to vector<8x8xf32>
    %c0_111 = arith.constant 0 : index
    %c0_112 = arith.constant 0 : index
    %c0_113 = arith.constant 0 : index
    %c21_114 = arith.constant 21 : index
    %99 = vector.load %arg3[%c0_111, %c0_112, %c0_113, %c21_114] : memref<1x1x8x256xf32, #tpu.memory_space<vmem>>, vector<1x1x8x128xf32>
    %100 = vector.shape_cast %99 : vector<1x1x8x128xf32> to vector<8x128xf32>
    %cst_115 = arith.constant dense<0.000000e+00> : vector<8x128xf32>
    %101 = tpu.matmul %98, %100, %cst_115 {dimension_numbers = #tpu.dot_dimension_numbers<[1], [0], [0], [1], [0, 0, 1, 1], [], []>} : vector<8x8xf32>, vector<8x128xf32>, vector<8x128xf32> -> vector<8x128xf32>
    %102 = arith.addf %96, %101 : vector<8x128xf32>
    %c17 = arith.constant 17 : index
    %c0_116 = arith.constant 0 : index
    %c0_117 = arith.constant 0 : index
    %103 = vector.load %arg5[%c17, %c0_116, %c0_117] : memref<27x8x8xf32, #tpu.memory_space<vmem>>, vector<1x8x8xf32>
    %104 = vector.shape_cast %103 : vector<1x8x8xf32> to vector<8x8xf32>
    %c0_118 = arith.constant 0 : index
    %c0_119 = arith.constant 0 : index
    %c0_120 = arith.constant 0 : index
    %c22_121 = arith.constant 22 : index
    %105 = vector.load %arg3[%c0_118, %c0_119, %c0_120, %c22_121] : memref<1x1x8x256xf32, #tpu.memory_space<vmem>>, vector<1x1x8x128xf32>
    %106 = vector.shape_cast %105 : vector<1x1x8x128xf32> to vector<8x128xf32>
    %cst_122 = arith.constant dense<0.000000e+00> : vector<8x128xf32>
    %107 = tpu.matmul %104, %106, %cst_122 {dimension_numbers = #tpu.dot_dimension_numbers<[1], [0], [0], [1], [0, 0, 1, 1], [], []>} : vector<8x8xf32>, vector<8x128xf32>, vector<8x128xf32> -> vector<8x128xf32>
    %108 = arith.addf %102, %107 : vector<8x128xf32>
    %c18 = arith.constant 18 : index
    %c0_123 = arith.constant 0 : index
    %c0_124 = arith.constant 0 : index
    %109 = vector.load %arg5[%c18, %c0_123, %c0_124] : memref<27x8x8xf32, #tpu.memory_space<vmem>>, vector<1x8x8xf32>
    %110 = vector.shape_cast %109 : vector<1x8x8xf32> to vector<8x8xf32>
    %c0_125 = arith.constant 0 : index
    %c0_126 = arith.constant 0 : index
    %c0_127 = arith.constant 0 : index
    %c0_128 = arith.constant 0 : index
    %111 = vector.load %arg4[%c0_125, %c0_126, %c0_127, %c0_128] : memref<1x1x8x256xf32, #tpu.memory_space<vmem>>, vector<1x1x8x128xf32>
    %112 = vector.shape_cast %111 : vector<1x1x8x128xf32> to vector<8x128xf32>
    %cst_129 = arith.constant dense<0.000000e+00> : vector<8x128xf32>
    %113 = tpu.matmul %110, %112, %cst_129 {dimension_numbers = #tpu.dot_dimension_numbers<[1], [0], [0], [1], [0, 0, 1, 1], [], []>} : vector<8x8xf32>, vector<8x128xf32>, vector<8x128xf32> -> vector<8x128xf32>
    %114 = arith.addf %108, %113 : vector<8x128xf32>
    %c19 = arith.constant 19 : index
    %c0_130 = arith.constant 0 : index
    %c0_131 = arith.constant 0 : index
    %115 = vector.load %arg5[%c19, %c0_130, %c0_131] : memref<27x8x8xf32, #tpu.memory_space<vmem>>, vector<1x8x8xf32>
    %116 = vector.shape_cast %115 : vector<1x8x8xf32> to vector<8x8xf32>
    %c0_132 = arith.constant 0 : index
    %c0_133 = arith.constant 0 : index
    %c0_134 = arith.constant 0 : index
    %c1_135 = arith.constant 1 : index
    %117 = vector.load %arg4[%c0_132, %c0_133, %c0_134, %c1_135] : memref<1x1x8x256xf32, #tpu.memory_space<vmem>>, vector<1x1x8x128xf32>
    %118 = vector.shape_cast %117 : vector<1x1x8x128xf32> to vector<8x128xf32>
    %cst_136 = arith.constant dense<0.000000e+00> : vector<8x128xf32>
    %119 = tpu.matmul %116, %118, %cst_136 {dimension_numbers = #tpu.dot_dimension_numbers<[1], [0], [0], [1], [0, 0, 1, 1], [], []>} : vector<8x8xf32>, vector<8x128xf32>, vector<8x128xf32> -> vector<8x128xf32>
    %120 = arith.addf %114, %119 : vector<8x128xf32>
    %c20_137 = arith.constant 20 : index
    %c0_138 = arith.constant 0 : index
    %c0_139 = arith.constant 0 : index
    %121 = vector.load %arg5[%c20_137, %c0_138, %c0_139] : memref<27x8x8xf32, #tpu.memory_space<vmem>>, vector<1x8x8xf32>
    %122 = vector.shape_cast %121 : vector<1x8x8xf32> to vector<8x8xf32>
    %c0_140 = arith.constant 0 : index
    %c0_141 = arith.constant 0 : index
    %c0_142 = arith.constant 0 : index
    %c2_143 = arith.constant 2 : index
    %123 = vector.load %arg4[%c0_140, %c0_141, %c0_142, %c2_143] : memref<1x1x8x256xf32, #tpu.memory_space<vmem>>, vector<1x1x8x128xf32>
    %124 = vector.shape_cast %123 : vector<1x1x8x128xf32> to vector<8x128xf32>
    %cst_144 = arith.constant dense<0.000000e+00> : vector<8x128xf32>
    %125 = tpu.matmul %122, %124, %cst_144 {dimension_numbers = #tpu.dot_dimension_numbers<[1], [0], [0], [1], [0, 0, 1, 1], [], []>} : vector<8x8xf32>, vector<8x128xf32>, vector<8x128xf32> -> vector<8x128xf32>
    %126 = arith.addf %120, %125 : vector<8x128xf32>
    %c21_145 = arith.constant 21 : index
    %c0_146 = arith.constant 0 : index
    %c0_147 = arith.constant 0 : index
    %127 = vector.load %arg5[%c21_145, %c0_146, %c0_147] : memref<27x8x8xf32, #tpu.memory_space<vmem>>, vector<1x8x8xf32>
    %128 = vector.shape_cast %127 : vector<1x8x8xf32> to vector<8x8xf32>
    %c0_148 = arith.constant 0 : index
    %c0_149 = arith.constant 0 : index
    %c0_150 = arith.constant 0 : index
    %c10_151 = arith.constant 10 : index
    %129 = vector.load %arg4[%c0_148, %c0_149, %c0_150, %c10_151] : memref<1x1x8x256xf32, #tpu.memory_space<vmem>>, vector<1x1x8x128xf32>
    %130 = vector.shape_cast %129 : vector<1x1x8x128xf32> to vector<8x128xf32>
    %cst_152 = arith.constant dense<0.000000e+00> : vector<8x128xf32>
    %131 = tpu.matmul %128, %130, %cst_152 {dimension_numbers = #tpu.dot_dimension_numbers<[1], [0], [0], [1], [0, 0, 1, 1], [], []>} : vector<8x8xf32>, vector<8x128xf32>, vector<8x128xf32> -> vector<8x128xf32>
    %132 = arith.addf %126, %131 : vector<8x128xf32>
    %c22_153 = arith.constant 22 : index
    %c0_154 = arith.constant 0 : index
    %c0_155 = arith.constant 0 : index
    %133 = vector.load %arg5[%c22_153, %c0_154, %c0_155] : memref<27x8x8xf32, #tpu.memory_space<vmem>>, vector<1x8x8xf32>
    %134 = vector.shape_cast %133 : vector<1x8x8xf32> to vector<8x8xf32>
    %c0_156 = arith.constant 0 : index
    %c0_157 = arith.constant 0 : index
    %c0_158 = arith.constant 0 : index
    %c11_159 = arith.constant 11 : index
    %135 = vector.load %arg4[%c0_156, %c0_157, %c0_158, %c11_159] : memref<1x1x8x256xf32, #tpu.memory_space<vmem>>, vector<1x1x8x128xf32>
    %136 = vector.shape_cast %135 : vector<1x1x8x128xf32> to vector<8x128xf32>
    %cst_160 = arith.constant dense<0.000000e+00> : vector<8x128xf32>
    %137 = tpu.matmul %134, %136, %cst_160 {dimension_numbers = #tpu.dot_dimension_numbers<[1], [0], [0], [1], [0, 0, 1, 1], [], []>} : vector<8x8xf32>, vector<8x128xf32>, vector<8x128xf32> -> vector<8x128xf32>
    %138 = arith.addf %132, %137 : vector<8x128xf32>
    %c23 = arith.constant 23 : index
    %c0_161 = arith.constant 0 : index
    %c0_162 = arith.constant 0 : index
    %139 = vector.load %arg5[%c23, %c0_161, %c0_162] : memref<27x8x8xf32, #tpu.memory_space<vmem>>, vector<1x8x8xf32>
    %140 = vector.shape_cast %139 : vector<1x8x8xf32> to vector<8x8xf32>
    %c0_163 = arith.constant 0 : index
    %c0_164 = arith.constant 0 : index
    %c0_165 = arith.constant 0 : index
    %c12_166 = arith.constant 12 : index
    %141 = vector.load %arg4[%c0_163, %c0_164, %c0_165, %c12_166] : memref<1x1x8x256xf32, #tpu.memory_space<vmem>>, vector<1x1x8x128xf32>
    %142 = vector.shape_cast %141 : vector<1x1x8x128xf32> to vector<8x128xf32>
    %cst_167 = arith.constant dense<0.000000e+00> : vector<8x128xf32>
    %143 = tpu.matmul %140, %142, %cst_167 {dimension_numbers = #tpu.dot_dimension_numbers<[1], [0], [0], [1], [0, 0, 1, 1], [], []>} : vector<8x8xf32>, vector<8x128xf32>, vector<8x128xf32> -> vector<8x128xf32>
    %144 = arith.addf %138, %143 : vector<8x128xf32>
    %c24 = arith.constant 24 : index
    %c0_168 = arith.constant 0 : index
    %c0_169 = arith.constant 0 : index
    %145 = vector.load %arg5[%c24, %c0_168, %c0_169] : memref<27x8x8xf32, #tpu.memory_space<vmem>>, vector<1x8x8xf32>
    %146 = vector.shape_cast %145 : vector<1x8x8xf32> to vector<8x8xf32>
    %c0_170 = arith.constant 0 : index
    %c0_171 = arith.constant 0 : index
    %c0_172 = arith.constant 0 : index
    %c20_173 = arith.constant 20 : index
    %147 = vector.load %arg4[%c0_170, %c0_171, %c0_172, %c20_173] : memref<1x1x8x256xf32, #tpu.memory_space<vmem>>, vector<1x1x8x128xf32>
    %148 = vector.shape_cast %147 : vector<1x1x8x128xf32> to vector<8x128xf32>
    %cst_174 = arith.constant dense<0.000000e+00> : vector<8x128xf32>
    %149 = tpu.matmul %146, %148, %cst_174 {dimension_numbers = #tpu.dot_dimension_numbers<[1], [0], [0], [1], [0, 0, 1, 1], [], []>} : vector<8x8xf32>, vector<8x128xf32>, vector<8x128xf32> -> vector<8x128xf32>
    %150 = arith.addf %144, %149 : vector<8x128xf32>
    %c25 = arith.constant 25 : index
    %c0_175 = arith.constant 0 : index
    %c0_176 = arith.constant 0 : index
    %151 = vector.load %arg5[%c25, %c0_175, %c0_176] : memref<27x8x8xf32, #tpu.memory_space<vmem>>, vector<1x8x8xf32>
    %152 = vector.shape_cast %151 : vector<1x8x8xf32> to vector<8x8xf32>
    %c0_177 = arith.constant 0 : index
    %c0_178 = arith.constant 0 : index
    %c0_179 = arith.constant 0 : index
    %c21_180 = arith.constant 21 : index
    %153 = vector.load %arg4[%c0_177, %c0_178, %c0_179, %c21_180] : memref<1x1x8x256xf32, #tpu.memory_space<vmem>>, vector<1x1x8x128xf32>
    %154 = vector.shape_cast %153 : vector<1x1x8x128xf32> to vector<8x128xf32>
    %cst_181 = arith.constant dense<0.000000e+00> : vector<8x128xf32>
    %155 = tpu.matmul %152, %154, %cst_181 {dimension_numbers = #tpu.dot_dimension_numbers<[1], [0], [0], [1], [0, 0, 1, 1], [], []>} : vector<8x8xf32>, vector<8x128xf32>, vector<8x128xf32> -> vector<8x128xf32>
    %156 = arith.addf %150, %155 : vector<8x128xf32>
    %c26 = arith.constant 26 : index
    %c0_182 = arith.constant 0 : index
    %c0_183 = arith.constant 0 : index
    %157 = vector.load %arg5[%c26, %c0_182, %c0_183] : memref<27x8x8xf32, #tpu.memory_space<vmem>>, vector<1x8x8xf32>
    %158 = vector.shape_cast %157 : vector<1x8x8xf32> to vector<8x8xf32>
    %c0_184 = arith.constant 0 : index
    %c0_185 = arith.constant 0 : index
    %c0_186 = arith.constant 0 : index
    %c22_187 = arith.constant 22 : index
    %159 = vector.load %arg4[%c0_184, %c0_185, %c0_186, %c22_187] : memref<1x1x8x256xf32, #tpu.memory_space<vmem>>, vector<1x1x8x128xf32>
    %160 = vector.shape_cast %159 : vector<1x1x8x128xf32> to vector<8x128xf32>
    %cst_188 = arith.constant dense<0.000000e+00> : vector<8x128xf32>
    %161 = tpu.matmul %158, %160, %cst_188 {dimension_numbers = #tpu.dot_dimension_numbers<[1], [0], [0], [1], [0, 0, 1, 1], [], []>} : vector<8x8xf32>, vector<8x128xf32>, vector<8x128xf32> -> vector<8x128xf32>
    %162 = arith.addf %156, %161 : vector<8x128xf32>
    %c0_189 = arith.constant 0 : index
    %c0_190 = arith.constant 0 : index
    %c0_191 = arith.constant 0 : index
    %c0_192 = arith.constant 0 : index
    %163 = vector.load %arg6[%c0_189, %c0_190, %c0_191, %c0_192] : memref<1x1x8x128xf32, #tpu.memory_space<vmem>>, vector<1x1x8x128xf32>
    %164 = vector.shape_cast %163 : vector<1x1x8x128xf32> to vector<8x128xf32>
    %165 = vector.shape_cast %162 : vector<8x128xf32> to vector<1x1x8x128xf32>
    tpu.vector_store %arg6[%c0_189, %c0_190, %c0_191, %c0_192], %165 {strides = array<i32>} : memref<1x1x8x128xf32, #tpu.memory_space<vmem>>, vector<1x1x8x128xf32>,
    %166 = tpu.iota {dimensions = array<i32: 1>} : vector<1x128xi32>
    %c10_i32 = arith.constant 10 : i32
    %c0_i32 = arith.constant 0 : i32
    %167 = arith.cmpi eq, %c10_i32, %c0_i32 : i32
    %c1_i32 = arith.constant 1 : i32
    %168 = arith.select %167, %c1_i32, %c10_i32 : i32
    %169 = vector.broadcast %168 : i32 to vector<1x128xi32>
    %170 = arith.remsi %166, %169 : vector<1x128xi32>
    %c0_i32_193 = arith.constant 0 : i32
    %171 = vector.broadcast %c0_i32_193 : i32 to vector<1x128xi32>
    %172 = arith.cmpi ne, %170, %171 : vector<1x128xi32>
    %c0_i32_194 = arith.constant 0 : i32
    %173 = vector.broadcast %c0_i32_194 : i32 to vector<1x128xi32>
    %174 = arith.cmpi slt, %170, %173 : vector<1x128xi32>
    %c0_i32_195 = arith.constant 0 : i32
    %175 = arith.cmpi slt, %168, %c0_i32_195 : i32
    %176 = vector.broadcast %175 : i1 to vector<1x128xi1>
    %177 = vector.broadcast %176 : vector<1x128xi1> to vector<1x128xi1>
    %178 = arith.xori %174, %177 : vector<1x128xi1>
    %179 = arith.andi %178, %172 : vector<1x128xi1>
    %180 = vector.broadcast %168 : i32 to vector<1x128xi32>
    %181 = arith.addi %170, %180 : vector<1x128xi32>
    %182 = arith.select %179, %181, %170 : vector<1x128xi1>, vector<1x128xi32>
    %c8_i32 = arith.constant 8 : i32
    %183 = vector.broadcast %c8_i32 : i32 to vector<1x128xi32>
    %184 = arith.cmpi slt, %182, %183 : vector<1x128xi32>
    %c80_i32 = arith.constant 80 : i32
    %185 = vector.broadcast %c80_i32 : i32 to vector<1x128xi32>
    %186 = arith.cmpi slt, %166, %185 : vector<1x128xi32>
    %187 = arith.andi %184, %186 : vector<1x128xi1>
    %188 = arith.extui %187 : vector<1x128xi1> to vector<1x128xi32>
    %189 = arith.sitofp %188 : vector<1x128xi32> to vector<1x128xf32>
    %190 = vector.broadcast %189 : vector<1x128xf32> to vector<8x128xf32>
    %191 = arith.mulf %162, %190 : vector<8x128xf32>
    %cst_196 = arith.constant dense<0.000000e+00> : vector<8xf32>
    %192 = vector.multi_reduction <add>, %191, %cst_196 [1] : vector<8x128xf32> to vector<8xf32>
    %193 = vector.shape_cast %192 : vector<8xf32> to vector<8x1xf32>
    %c0_197 = arith.constant 0 : index
    %c0_198 = arith.constant 0 : index
    %c0_199 = arith.constant 0 : index
    %c0_200 = arith.constant 0 : index
    %194 = vector.load %arg7[%c0_197, %c0_198, %c0_199, %c0_200] : memref<1x1x8x2xf32, #tpu.memory_space<vmem>>, vector<1x1x8x1xf32>
    %195 = vector.shape_cast %194 : vector<1x1x8x1xf32> to vector<8x1xf32>
    %196 = vector.shape_cast %193 : vector<8x1xf32> to vector<1x1x8x1xf32>
    tpu.vector_store %arg7[%c0_197, %c0_198, %c0_199, %c0_200], %196 {strides = array<i32>} : memref<1x1x8x2xf32, #tpu.memory_space<vmem>>, vector<1x1x8x1xf32>,
    %197 = arith.mulf %191, %162 : vector<8x128xf32>
    %cst_201 = arith.constant dense<0.000000e+00> : vector<8xf32>
    %198 = vector.multi_reduction <add>, %197, %cst_201 [1] : vector<8x128xf32> to vector<8xf32>
    %199 = vector.shape_cast %198 : vector<8xf32> to vector<8x1xf32>
    %c0_202 = arith.constant 0 : index
    %c0_203 = arith.constant 0 : index
    %c0_204 = arith.constant 0 : index
    %c1_205 = arith.constant 1 : index
    %200 = vector.load %arg7[%c0_202, %c0_203, %c0_204, %c1_205] : memref<1x1x8x2xf32, #tpu.memory_space<vmem>>, vector<1x1x8x1xf32>
    %201 = vector.shape_cast %200 : vector<1x1x8x1xf32> to vector<8x1xf32>
    %202 = vector.shape_cast %199 : vector<8x1xf32> to vector<1x1x8x1xf32>
    tpu.vector_store %arg7[%c0_202, %c0_203, %c0_204, %c1_205], %202 {strides = array<i32>} : memref<1x1x8x2xf32, #tpu.memory_space<vmem>>, vector<1x1x8x1xf32>,
    return
  }
  func.func @transform_0(%arg0: i32, %arg1: i32) -> (i32, i32, i32, i32) {
    %c0_i32 = arith.constant 0 : i32
    %0 = arith.addi %arg1, %c0_i32 : i32
    %c0_i32_0 = arith.constant 0 : i32
    %c0_i32_1 = arith.constant 0 : i32
    %c0_i32_2 = arith.constant 0 : i32
    return %arg0, %0, %c0_i32_0, %c0_i32_1 : i32, i32, i32, i32
  }
  func.func @transform_1(%arg0: i32, %arg1: i32) -> (i32, i32, i32, i32) {
    %c1_i32 = arith.constant 1 : i32
    %0 = arith.addi %arg1, %c1_i32 : i32
    %c0_i32 = arith.constant 0 : i32
    %c0_i32_0 = arith.constant 0 : i32
    %c0_i32_1 = arith.constant 0 : i32
    return %arg0, %0, %c0_i32, %c0_i32_0 : i32, i32, i32, i32
  }
  func.func @transform_2(%arg0: i32, %arg1: i32) -> (i32, i32, i32, i32) {
    %c2_i32 = arith.constant 2 : i32
    %0 = arith.addi %arg1, %c2_i32 : i32
    %c0_i32 = arith.constant 0 : i32
    %c0_i32_0 = arith.constant 0 : i32
    %c0_i32_1 = arith.constant 0 : i32
    return %arg0, %0, %c0_i32, %c0_i32_0 : i32, i32, i32, i32
  }
  func.func @transform_3(%arg0: i32, %arg1: i32) -> (i32, i32, i32) {
    %c0_i32 = arith.constant 0 : i32
    %c0_i32_0 = arith.constant 0 : i32
    %c0_i32_1 = arith.constant 0 : i32
    %c0_i32_2 = arith.constant 0 : i32
    return %c0_i32, %c0_i32_0, %c0_i32_1 : i32, i32, i32
  }
  func.func @transform_4(%arg0: i32, %arg1: i32) -> (i32, i32, i32, i32) {
    %c0_i32 = arith.constant 0 : i32
    %c0_i32_0 = arith.constant 0 : i32
    %c0_i32_1 = arith.constant 0 : i32
    return %arg0, %arg1, %c0_i32, %c0_i32_0 : i32, i32, i32, i32
  }
  func.func @transform_5(%arg0: i32, %arg1: i32) -> (i32, i32, i32, i32) {
    %c0_i32 = arith.constant 0 : i32
    %c0_i32_0 = arith.constant 0 : i32
    %c0_i32_1 = arith.constant 0 : i32
    return %arg0, %arg1, %c0_i32, %c0_i32_0 : i32, i32, i32, i32
  }
}

module attributes {stable_mosaic.version = 11 : i64} {
  func.func @_bn_relu_kernel(%arg0: i32, %arg1: memref<8x8x128xf32, #tpu.memory_space<vmem>>, %arg2: memref<1x8x1xf32, #tpu.memory_space<vmem>>, %arg3: memref<1x8x1xf32, #tpu.memory_space<vmem>>, %arg4: memref<8x8x128xf32, #tpu.memory_space<vmem>>) attributes {dimension_semantics = [#tpu.dimension_semantics<parallel>], iteration_bounds = array<i64: 2>, scalar_prefetch = 0 : i64, scratch_operands = 0 : i64, tpu.core_type = #tpu.core_type<tc>, window_params = [{transform_indices = @transform_0, window_bounds = array<i64: 8, 8, 128>}, {pipeline_mode = #tpu.pipeline_mode<synchronous>, transform_indices = @transform_1, window_bounds = array<i64: 1, 8, 1>}, {pipeline_mode = #tpu.pipeline_mode<synchronous>, transform_indices = @transform_2, window_bounds = array<i64: 1, 8, 1>}, {transform_indices = @transform_3, window_bounds = array<i64: 8, 8, 128>}]} {
    %0 = tpu.iota {dimensions = array<i32: 2>} : vector<1x1x128xi32>
    %c10_i32 = arith.constant 10 : i32
    %c0_i32 = arith.constant 0 : i32
    %1 = arith.cmpi eq, %c10_i32, %c0_i32 : i32
    %c1_i32 = arith.constant 1 : i32
    %2 = arith.select %1, %c1_i32, %c10_i32 : i32
    %3 = vector.broadcast %2 : i32 to vector<1x1x128xi32>
    %4 = arith.remsi %0, %3 : vector<1x1x128xi32>
    %c0_i32_0 = arith.constant 0 : i32
    %5 = vector.broadcast %c0_i32_0 : i32 to vector<1x1x128xi32>
    %6 = arith.cmpi ne, %4, %5 : vector<1x1x128xi32>
    %c0_i32_1 = arith.constant 0 : i32
    %7 = vector.broadcast %c0_i32_1 : i32 to vector<1x1x128xi32>
    %8 = arith.cmpi slt, %4, %7 : vector<1x1x128xi32>
    %c0_i32_2 = arith.constant 0 : i32
    %9 = arith.cmpi slt, %2, %c0_i32_2 : i32
    %10 = vector.broadcast %9 : i1 to vector<1x1x128xi1>
    %11 = vector.broadcast %10 : vector<1x1x128xi1> to vector<1x1x128xi1>
    %12 = arith.xori %8, %11 : vector<1x1x128xi1>
    %13 = arith.andi %12, %6 : vector<1x1x128xi1>
    %14 = vector.broadcast %2 : i32 to vector<1x1x128xi32>
    %15 = arith.addi %4, %14 : vector<1x1x128xi32>
    %16 = arith.select %13, %15, %4 : vector<1x1x128xi1>, vector<1x1x128xi32>
    %c8_i32 = arith.constant 8 : i32
    %17 = vector.broadcast %c8_i32 : i32 to vector<1x1x128xi32>
    %18 = arith.cmpi slt, %16, %17 : vector<1x1x128xi32>
    %c80_i32 = arith.constant 80 : i32
    %19 = vector.broadcast %c80_i32 : i32 to vector<1x1x128xi32>
    %20 = arith.cmpi slt, %0, %19 : vector<1x1x128xi32>
    %21 = arith.andi %18, %20 : vector<1x1x128xi1>
    %22 = arith.extui %21 : vector<1x1x128xi1> to vector<1x1x128xi32>
    %23 = arith.sitofp %22 : vector<1x1x128xi32> to vector<1x1x128xf32>
    %c0 = arith.constant 0 : index
    %c0_3 = arith.constant 0 : index
    %c0_4 = arith.constant 0 : index
    %24 = vector.load %arg1[%c0, %c0_3, %c0_4] : memref<8x8x128xf32, #tpu.memory_space<vmem>>, vector<8x8x128xf32>
    %c0_5 = arith.constant 0 : index
    %c0_6 = arith.constant 0 : index
    %c0_7 = arith.constant 0 : index
    %25 = vector.load %arg2[%c0_5, %c0_6, %c0_7] : memref<1x8x1xf32, #tpu.memory_space<vmem>>, vector<1x8x1xf32>
    %26 = vector.broadcast %25 : vector<1x8x1xf32> to vector<8x8x128xf32>
    %27 = arith.mulf %24, %26 : vector<8x8x128xf32>
    %c0_8 = arith.constant 0 : index
    %c0_9 = arith.constant 0 : index
    %c0_10 = arith.constant 0 : index
    %28 = vector.load %arg3[%c0_8, %c0_9, %c0_10] : memref<1x8x1xf32, #tpu.memory_space<vmem>>, vector<1x8x1xf32>
    %29 = vector.broadcast %28 : vector<1x8x1xf32> to vector<8x8x128xf32>
    %30 = arith.addf %27, %29 : vector<8x8x128xf32>
    %cst = arith.constant 0.000000e+00 : f32
    %31 = vector.broadcast %cst : f32 to vector<8x8x128xf32>
    %32 = arith.maximumf %30, %31 : vector<8x8x128xf32>
    %33 = vector.broadcast %23 : vector<1x1x128xf32> to vector<8x8x128xf32>
    %34 = arith.mulf %32, %33 : vector<8x8x128xf32>
    %c0_11 = arith.constant 0 : index
    %c0_12 = arith.constant 0 : index
    %c0_13 = arith.constant 0 : index
    %35 = vector.load %arg4[%c0_11, %c0_12, %c0_13] : memref<8x8x128xf32, #tpu.memory_space<vmem>>, vector<8x8x128xf32>
    tpu.vector_store %arg4[%c0_11, %c0_12, %c0_13], %34 {strides = array<i32>} : memref<8x8x128xf32, #tpu.memory_space<vmem>>, vector<8x8x128xf32>,
    return
  }
  func.func @transform_0(%arg0: i32) -> (i32, i32, i32) {
    %c0_i32 = arith.constant 0 : i32
    %c0_i32_0 = arith.constant 0 : i32
    %c0_i32_1 = arith.constant 0 : i32
    return %arg0, %c0_i32, %c0_i32_0 : i32, i32, i32
  }
  func.func @transform_1(%arg0: i32) -> (i32, i32, i32) {
    %c0_i32 = arith.constant 0 : i32
    %c0_i32_0 = arith.constant 0 : i32
    %c0_i32_1 = arith.constant 0 : i32
    %c0_i32_2 = arith.constant 0 : i32
    return %c0_i32, %c0_i32_0, %c0_i32_1 : i32, i32, i32
  }
  func.func @transform_2(%arg0: i32) -> (i32, i32, i32) {
    %c0_i32 = arith.constant 0 : i32
    %c0_i32_0 = arith.constant 0 : i32
    %c0_i32_1 = arith.constant 0 : i32
    %c0_i32_2 = arith.constant 0 : i32
    return %c0_i32, %c0_i32_0, %c0_i32_1 : i32, i32, i32
  }
  func.func @transform_3(%arg0: i32) -> (i32, i32, i32) {
    %c0_i32 = arith.constant 0 : i32
    %c0_i32_0 = arith.constant 0 : i32
    %c0_i32_1 = arith.constant 0 : i32
    return %arg0, %c0_i32, %c0_i32_0 : i32, i32, i32
  }
}

</mosaic_0001>

<bundles_post_ra>
// kernel: down_forward.5
= control target key start
LH: loop header
LB: loop body
LE: loop exit
PB: predicated region body
PF: predicated region fallthrough
CT: control target
= control target key end

     0   :  { %s891_s15 = smov 0   ;;  %s893_s16 = smov 0   ;;  %s1047_s0 = inlined_call_operand.vmem [shape: f32[2,10,4,9,9], index: 0, kind: input, shape index: {}]   ;;  %s1048_s1 = inlined_call_operand.vmem [shape: f32[2,10,4,9,9], index: 1, kind: input, shape index: {}]   ;;  %s1049_s2 = inlined_call_operand.vmem [shape: f32[2,10,4,9,9], index: 2, kind: input, shape index: {}]   ;;  %s1050_s3 = inlined_call_operand.vmem [shape: f32[2,10,4,9,9], index: 3, kind: input, shape index: {}]   ;;  %s1051_s4 = inlined_call_operand.vmem [shape: f32[2,8,4,8,8], index: 4, kind: output, shape index: {}]  }
   0x1   :  { %s895_s17 = smov 0   ;;  %s897_s18 = smov 0  }
   0x2   :  { %s899_s19 = smov 0   ;;  %s901_s20 = smov 0  }
   0x3   :  { %s903_s21 = smov 0  }
   0x4 LB: > { %s26_s22 = sadd.s32 1, %s850_s18  ;;  %s29_s23 = sadd.s32 1, %s854_s19  ;;  %s862_s21 = sphi %s903_s21, %s14_s21   ;;  %s858_s20 = sphi %s901_s20, %s1057_s20   ;;  %s854_s19 = sphi %s899_s19, %s1056_s19   ;;  %s850_s18 = sphi %s897_s18, %s1055_s18   ;;  %s846_s17 = sphi %s895_s17, %s1054_s17   ;;  %s842_s16 = sphi %s893_s16, %s1053_s16   ;;  %s838_s15 = sphi %s891_s15, %s1052_s15  }
   0x5   : > { %p27_p0 = scmp.ge.s32.totalorder %s26_s22, 3  ;;  %p733_p1 = scmp.ge.s32.totalorder %s862_s21, 1 }
   0x6   : > { %p253_p2 = scmp.lt.s32.totalorder %s862_s21, 49  ;;  %s33_s24 = sadd.s32 1, %s858_s20 }
   0x7   : > { %s1059_s22 = smov (%p27_p0, %s26_s22), 0  ;;  %s1061_s23 = smov (!%p27_p0, %s29_s23), %s854_s19 }
   0x8   : > { %p254_p3 = pnand %p733_p1, %p253_p2  ;;  %p31_p4 = scmp.ge.s32.totalorder %s1061_s23, 8 }
   0x9   : > { %s318_s25 = sadd.s32 (!%p254_p3), %s838_s15, %s842_s16  ;;  %p319_p6 = scmp.lt.s32.totalorder (!%p254_p3), %s846_s17, 1 }
   0xa   : > { %s1063_s23 = smov (%p31_p4, %s1061_s23), 0  ;;  %s1065_s24 = smov (!%p31_p4, %s33_s24), %s858_s20 }
   0xb   : > { %p35_p5 = scmp.ge.s32.totalorder %s1065_s24, 2  ;;  %257 = sbr.rel (%p254_p3) target bundleno = 399 (0x18f), region = 36 }
   0xc   : > { %p321_p7 = scmp.lt.s32.totalorder (!%p254_p3), %s318_s25, 9  ;;  %p364_p8 = scmp.lt.s32.totalorder (!%p254_p3), %s842_s16, 7 }
   0xd   : > { %s1067_s24 = smov (%p35_p5, %s1065_s24), 0  ;;  %s864_s8 = smov (!%p254_p3), 127  }
   0xe   : > { %p745_p9 = scmp.ne.s32.totalorder (!%p254_p3), %s838_s15, 0 }
  0x12   : > { %s1069_s17 = smov (!%p319_p6, %s846_s17), 1  ;;  %s1071_s25 = smov (!%p321_p7, %s318_s25), 9 }
  0x13   : > { %s749_s26 = smul.u32 80, %s1069_s17  ;;  %s734_s27 = sshll.u32 %s1071_s25, 3  ;;  %vm543_vm0 = vcmask (!%p745_p9), 64512  }
  0x14   : > { %s743_s7 = sshll.u32 %s1069_s17, 5  ;;  %s1073_s16 = smov (!%p364_p8, %s842_s16), 7 }
  0x15   : > { %s325_s28 = sadd.s32 %s749_s26, %s734_s27  ;;  %s742_s9 = sshll.u32 %s1073_s16, 2 }
  0x16   : > { %s940_s29 = sshll.u32 %s325_s28, 3  ;;  %s368_s10 = sadd.s32 %s743_s7, %s742_s9 }
  0x17   : > { %s946_s6 = scalar_lea.vmem %s1049_s2, %s940_s29  ;;  %s338_s13 = scalar_lea.vmem %s1048_s1, %s940_s29 }
  0x18   : > { %v391_v0 = vld [vmem:[%s946_s6 + $0x1] sm:$0xff]  ;;  %v392_v2 = vld [vmem:[%s946_s6 + $0x11] sm:$0xff]  ;;  %s744_s14 = sshll.u32 %s368_s10, 3  ;;  %s865_s16 = smov 1  }
  0x19   : > { %v393_v1 = vld [vmem:[%s946_s6 + $0x21] sm:$0xff]  ;;  %443 = vrot.lane.b32.xlu0 %v391_v0, %s864_s8  ;;  %v394_v3 = vld [vmem:[%s946_s6 + $0x31] sm:$0xff]  ;;  %s962_s26 = scalar_lea.vmem %s1051_s4, %s744_s14  ;;  %s976_s30 = scalar_lea.vmem %s1050_s3, %s940_s29 }
  0x1a   : > { %447 = vrot.lane.b32.xlu1 %v393_v1, %s864_s8  ;;  %v966_v4 = vld [vmem:[%s338_s13 + $0x11] sm:$0xff]  ;;  %v379_v5 = vld [vmem:[%s338_s13 + $0x1] sm:$0xff]  ;;  %s327_s7 = scalar_lea.vmem %s1047_s0, %s940_s29 }
  0x1b   : > { %v969_v6 = vld [vmem:[%s338_s13 + $0x31] sm:$0xff]  ;;  %v381_v7 = vld [vmem:[%s338_s13 + $0x21] sm:$0xff] }
  0x1c   : > { %v387_v8 = vld [vmem:[%s976_s30 + $0x1] sm:$0xff]  ;;  %v388_v13 = vld [vmem:[%s976_s30 + $0x11] sm:$0xff] }
  0x1d   : > { %445 = vrot.lane.b32.xlu0 %v392_v2, %s864_s8  ;;  %v389_v10 = vld [vmem:[%s976_s30 + $0x21] sm:$0xff]  ;;  %v390_v16 = vld [vmem:[%s976_s30 + $0x31] sm:$0xff] }
  0x1e   : > { %449 = vrot.lane.b32.xlu1 %v394_v3, %s864_s8  ;;  %v375_v20 = vld [vmem:[%s946_s6] sm:$0xff]  ;;  %v376_v21 = vld [vmem:[%s946_s6 + $0x10] sm:$0xff] }
  0x1f   : > { %v377_v22 = vld [vmem:[%s946_s6 + $0x20] sm:$0xff]  ;;  %v378_v24 = vld [vmem:[%s946_s6 + $0x30] sm:$0xff] }
  0x20   : > { %v371_v25 = vld [vmem:[%s976_s30] sm:$0xff]  ;;  %v372_v28 = vld [vmem:[%s976_s30 + $0x10] sm:$0xff] }
  0x21   : > { %419 = vrot.lane.b32.xlu0 %v379_v5, %s865_s16  ;;  %v373_v29 = vld [vmem:[%s976_s30 + $0x20] sm:$0xff]  ;;  %v374_v33 = vld [vmem:[%s976_s30 + $0x30] sm:$0xff] }
  0x22   : > { %421 = vrot.lane.b32.xlu1 %v966_v4, %s865_s16  ;;  %v383_v36 = vld [vmem:[%s327_s7 + $0x1] sm:$0xff]  ;;  %v384_v38 = vld [vmem:[%s327_s7 + $0x11] sm:$0xff] }
  0x23   : > { %v435_v37 = vmax.f32 %v383_v36, %v379_v5  ;;  %v385_v39 = vld [vmem:[%s327_s7 + $0x21] sm:$0xff]  ;;  %v436_v42 = vmax.f32 %v384_v38, %v966_v4  ;;  %v386_v44 = vld [vmem:[%s327_s7 + $0x31] sm:$0xff] }
  0x24   : > { %v437_v43 = vmax.f32 %v385_v39, %v381_v7  ;;  %v438_v49 = vmax.f32 %v386_v44, %v969_v6 }
  0x25   : > { %423 = vrot.lane.b32.xlu0 %v381_v7, %s865_s16 }
  0x26   : > { %425 = vrot.lane.b32.xlu1 %v969_v6, %s865_s16 }
  0x8b   : > { %v444_v9 = vpop.permute.xlu0 %443 }
  0x8c   : > { %v448_v11 = vpop.permute.xlu1 %447  ;;  %v455_v12 = vmax.f32 %v387_v8, %v444_v9 }
  0x8d   : > { %v457_v14 = vmax.f32 %v389_v10, %v448_v11 }
  0x8e   : > { %483 = vrot.lane.b32.xlu0 %v455_v12, %s865_s16 }
  0x8f   : > { %v446_v15 = vpop.permute.xlu0 %445 }
  0x90   : > { %v450_v17 = vpop.permute.xlu1 %449  ;;  %v456_v18 = vmax.f32 %v388_v13, %v446_v15 }
  0x91   : > { %v458_v19 = vmax.f32 %v390_v16, %v450_v17 }
  0x92   : > { %485 = vrot.lane.b32.xlu1 %v456_v18, %s865_s16  ;;  %487 = vrot.lane.b32.xlu0 %v457_v14, %s865_s16 }
  0x93   : > { %v420_v23 = vpop.permute.xlu0 %419 }
  0x94   : > { %v422_v26 = vpop.permute.xlu1 %421  ;;  %v431_v27 = vmax.f32 %v371_v25, %v420_v23 }
  0x95   : > { %v432_v31 = vmax.f32 %v372_v28, %v422_v26 }
  0x96   : > { %489 = vrot.lane.b32.xlu1 %v458_v19, %s865_s16  ;;  %399 = vrot.lane.b32.xlu0 %v375_v20, %s864_s8 }
  0x97   : > { %v424_v30 = vpop.permute.xlu0 %423 }
  0x98   : > { %v433_v32 = vmax.f32 %v373_v29, %v424_v30  ;;  %v426_v34 = vpop.permute.xlu1 %425 }
  0x99   : > { %v434_v35 = vmax.f32 %v374_v33, %v426_v34 }
  0x9a   : > { %401 = vrot.lane.b32.xlu1 %v376_v21, %s864_s8  ;;  %403 = vrot.lane.b32.xlu0 %v377_v22, %s864_s8 }
  0x9e   : > { %405 = vrot.lane.b32.xlu1 %v378_v24, %s864_s8  ;;  %523 = vrot.lane.b32.xlu0 %v387_v8, %s864_s8 }
  0xa2   : > { %525 = vrot.lane.b32.xlu1 %v388_v13, %s864_s8  ;;  %463 = vrot.lane.b32.xlu0 %v431_v27, %s864_s8 }
  0xa6   : > { %465 = vrot.lane.b32.xlu1 %v432_v31, %s864_s8  ;;  %467 = vrot.lane.b32.xlu0 %v433_v32, %s864_s8 }
  0xaa   : > { %469 = vrot.lane.b32.xlu1 %v434_v35, %s864_s8 }
 0x100   : > { %v484_v40 = vpop.permute.xlu0 %483 }
 0x101   : > { %v495_v41 = vmax.f32 %v435_v37, %v484_v40 }
 0x103   : > { %503 = vrot.lane.b32.xlu0 %v495_v41, %s864_s8 }
 0x104   : > { %v486_v45 = vpop.permute.xlu1 %485  ;;  %v488_v46 = vpop.permute.xlu0 %487 }
 0x105   : > { %v496_v47 = vmax.f32 %v436_v42, %v486_v45  ;;  %v497_v48 = vmax.f32 %v437_v43, %v488_v46 }
 0x107   : > { %505 = vrot.lane.b32.xlu1 %v496_v47, %s864_s8  ;;  %507 = vrot.lane.b32.xlu0 %v497_v48, %s864_s8 }
 0x108   : > { %v490_v50 = vpop.permute.xlu1 %489  ;;  %v400_v52 = vpop.permute.xlu0 %399 }
 0x109   : > { %v498_v51 = vmax.f32 %v438_v49, %v490_v50  ;;  %v411_v60 = vmax.f32 %v371_v25, %v400_v52 }
 0x10b   : > { %509 = vrot.lane.b32.xlu1 %v498_v51, %s864_s8  ;;  %527 = vrot.lane.b32.xlu0 %v389_v10, %s864_s8 }
 0x10c   : > { %v402_v53 = vpop.permute.xlu1 %401  ;;  %v404_v54 = vpop.permute.xlu0 %403 }
 0x10d   : > { %v412_v62 = vmax.f32 %v372_v28, %v402_v53  ;;  %v413_v2 = vmax.f32 %v373_v29, %v404_v54 }
 0x10f   : > { %529 = vrot.lane.b32.xlu1 %v390_v16, %s864_s8 }
 0x110   : > { %v406_v55 = vpop.permute.xlu1 %405  ;;  %v524_v56 = vpop.permute.xlu0 %523 }
 0x111   : > { %v414_v8 = vmax.f32 %v374_v33, %v406_v55 }
 0x114   : > { %v526_v57 = vpop.permute.xlu1 %525  ;;  %v464_v58 = vpop.permute.xlu0 %463 }
 0x115   : > { %v475_v63 = vmax.f32 %v411_v60, %v464_v58 }
 0x118   : > { %v466_v59 = vpop.permute.xlu1 %465  ;;  %v468_v61 = vpop.permute.xlu0 %467 }
 0x119   : > { %v476_v4 = vmax.f32 %v412_v62, %v466_v59  ;;  %v477_v9 = vmax.f32 %v413_v2, %v468_v61 }
 0x11c   : > { %v470_v0 = vpop.permute.xlu1 %469 }
 0x11d   : > { %v478_v15 = vmax.f32 %v414_v8, %v470_v0 }
 0x175   : > { %v504_v1 = vpop.permute.xlu0 %503 }
 0x176   : > { %v515_v3 = vmax.f32 %v475_v63, %v504_v1 }
 0x178   : > { %v535_v5 = vmax.f32 %v515_v3, %v524_v56 }
 0x179   : > { %v506_v6 = vpop.permute.xlu1 %505  ;;  %v508_v7 = vpop.permute.xlu0 %507 }
 0x17a   : > { %v516_v10 = vmax.f32 %v476_v4, %v506_v6  ;;  %v517_v12 = vmax.f32 %v477_v9, %v508_v7  ;;  %544 = vst.msk [vmem:[%s962_s26] sm:$0xff] (!%p745_p9), %vm543_vm0, %v535_v5 }
 0x17c   : > { %v536_v11 = vmax.f32 %v516_v10, %v526_v57  ;;  %542 = sbr.rel (%p745_p9) target bundleno = 389 (0x185), region = 40 }
 0x17d   : > { %v510_v13 = vpop.permute.xlu1 %509  ;;  %v528_v14 = vpop.permute.xlu0 %527 }
 0x17e   : > { %v537_v16 = vmax.f32 %v517_v12, %v528_v14  ;;  %v518_v17 = vmax.f32 %v478_v15, %v510_v13  ;;  %545 = vst.msk [vmem:[%s962_s26 + $0x8] sm:$0xff] (!%p745_p9), %vm543_vm0, %v536_v11 }
 0x180   : > { %546 = vst.msk [vmem:[%s962_s26 + $0x10] sm:$0xff] (!%p745_p9), %vm543_vm0, %v537_v16 }
 0x181   : > { %v530_v18 = vpop.permute.xlu1 %529 }
 0x182   : > { %v538_v19 = vmax.f32 %v518_v17, %v530_v18 }
 0x184   : > { %547 = vst.msk [vmem:[%s962_s26 + $0x18] sm:$0xff] %vm543_vm0, %v538_v19 }
 0x185 PF: > { %p746_p10 = scmp.le.s32.totalorder %s838_s15, 0 }
 0x186   : > { %v552_v20 = vld [vmem:[%s962_s26] sm:$0xff] (!%p746_p10)  ;;  %vm560_vm1 = vcmask (!%p746_p10), 64512  }
 0x187   : > { %551 = sbr.rel (%p746_p10) target bundleno = 399 (0x18f), region = 44  ;;  %v553_v21 = vld [vmem:[%s962_s26 + $0x8] sm:$0xff] (!%p746_p10)  ;;  %v556_v23 = vmax.f32 (!%p746_p10), %v552_v20, %v535_v5 }
 0x188   : > { %v557_v24 = vmax.f32 (!%p746_p10), %v553_v21, %v536_v11 }
 0x189   : > { %v554_v22 = vld [vmem:[%s962_s26 + $0x10] sm:$0xff] (!%p746_p10)  ;;  %561 = vst.msk [vmem:[%s962_s26] sm:$0xff] (!%p746_p10), %vm560_vm1, %v556_v23 }
 0x18a   : > { %v558_v25 = vmax.f32 (!%p746_p10), %v554_v22, %v537_v16  ;;  %562 = vst.msk [vmem:[%s962_s26 + $0x8] sm:$0xff] (!%p746_p10), %vm560_vm1, %v557_v24 }
 0x18b   : > { %v555_v26 = vld [vmem:[%s962_s26 + $0x18] sm:$0xff] (!%p746_p10) }
 0x18c   : > { %v559_v27 = vmax.f32 (!%p746_p10), %v555_v26, %v538_v19  ;;  %563 = vst.msk [vmem:[%s962_s26 + $0x10] sm:$0xff] (!%p746_p10), %vm560_vm1, %v558_v25 }
 0x18e   : > { %564 = vst.msk [vmem:[%s962_s26 + $0x18] sm:$0xff] %vm560_vm1, %v559_v27 }
 0x18f PF: > { %s14_s21 = sadd.s32 1, %s862_s21   ;;  %s1052_s15 = smov %s850_s18 }
 0x190   : > { %p11_p11 = scmp.ge.s32.totalorder %s14_s21, 50   ;;  %s1053_s16 = smov %s854_s19 }
 0x191   : > { %s1054_s17 = smov %s858_s20  ;;  %s1055_s18 = smov %s1059_s22 }
 0x192   : > { %s1056_s19 = smov %s1063_s23  ;;  %s1057_s20 = smov %s1067_s24 }
 0x193   :  { %13 = sbr.rel (!%p11_p11) target bundleno = 4 (0x4), region = 83 }

// kernel: down_forward.6
= control target key start
LH: loop header
LB: loop body
LE: loop exit
PB: predicated region body
PF: predicated region fallthrough
CT: control target
= control target key end

     0   :  { %s3235_s18 = smov 0   ;;  %s3237_s19 = smov 0   ;;  %s3621_s0 = inlined_call_operand.vmem [shape: f32[2,10,8,256], index: 0, kind: input, shape index: {}, may-alias: {0,1,2}]   ;;  %s3622_s1 = inlined_call_operand.vmem [shape: f32[2,10,8,256], index: 1, kind: input, shape index: {}, may-alias: {0,1,2}]   ;;  %s3623_s2 = inlined_call_operand.vmem [shape: f32[2,10,8,256], index: 2, kind: input, shape index: {}, may-alias: {0,1,2}]   ;;  %s3624_s3 = inlined_call_operand.vmem [shape: f32[27,8,8], index: 3, kind: input, shape index: {}]   ;;  %s3625_s4 = inlined_call_operand.vmem [shape: f32[2,8,8,128], index: 4, kind: output, shape index: {0}]   ;;  %s3626_s5 = inlined_call_operand.vmem [shape: f32[2,8,8,2], index: 5, kind: output, shape index: {1}]  }
   0x1   :  { %s3239_s20 = smov 0   ;;  %s3241_s21 = smov 0  }
   0x2   :  { %s3243_s22 = smov 0  }
   0x3 LB: > { %s25_s23 = sadd.s32 1, %s3185_s20  ;;  %s28_s24 = sadd.s32 1, %s3189_s21  ;;  %s3193_s22 = sphi %s3243_s22, %s16_s22   ;;  %s3189_s21 = sphi %s3241_s21, %s3630_s21   ;;  %s3185_s20 = sphi %s3239_s20, %s3629_s20   ;;  %s3181_s19 = sphi %s3237_s19, %s3628_s19   ;;  %s3177_s18 = sphi %s3235_s18, %s3627_s18  }
   0x4   : > { %p26_p0 = scmp.ge.s32.totalorder %s25_s23, 8  ;;  %p2795_p1 = scmp.ge.s32.totalorder %s3193_s22, 1 }
   0x5   : > { %p252_p2 = scmp.lt.s32.totalorder %s3193_s22, 17 }
   0x6   : > { %s3632_s23 = smov (%p26_p0, %s25_s23), 0  ;;  %s3634_s24 = smov (!%p26_p0, %s28_s24), %s3189_s21 }
   0x7   : > { %p253_p3 = pnand %p2795_p1, %p252_p2  ;;  %p30_p4 = scmp.ge.s32.totalorder %s3634_s24, 2 }
   0x8   : > { %p315_p5 = scmp.lt.s32.totalorder (!%p253_p3), %s3181_s19, 1  ;;  %s324_s25 = sadd.s32 (!%p253_p3), 1, %s3177_s18  ;;  %v3195_v0 = vmov (!%p253_p3), 0.0   ;;  %vm3196_vm0 = vmmov (!%p253_p3), 0   ;;  %vm696_vm1 = vcmask (!%p253_p3), 957440   ;;  %vm377_vm2 = vcmask (!%p253_p3), 64512  }
   0x9   : > { %s3636_s24 = smov (%p30_p4, %s3634_s24), 0  ;;  %256 = sbr.rel (%p253_p3) target bundleno = 609 (0x261), region = 36 }
   0xa   : > { %p327_p6 = scmp.lt.s32.totalorder (!%p253_p3), %s324_s25, 9  ;;  %p317_p7 = scmp.lt.s32.totalorder (!%p253_p3), %s3177_s18, 9  ;;  %2916 = vmatprep.subr.mxu1 (!%p253_p3), %v3195_v0  ;;  %2981 = vmatprep.subr.mxu0 (!%p253_p3), %v3195_v0  ;;  %v2831_v9 = vld [vmem:[%s3624_s3 + $0x68] sm:$0xff] (!%p253_p3)  ;;  %vm374_vm3 = vcmask (!%p253_p3), 1039360   ;;  %vm779_vm4 = vcmask (!%p253_p3), 949248   ;;  %v2833_v18 = vld [vmem:[%s3624_s3 + $0x70] sm:$0xff] (!%p253_p3) }
   0xb   : > { %2918 = vmatprep.mubr.msk.f32.mxu1 (!%p253_p3), %vm3196_vm0, %v3195_v0  ;;  %2983 = vmatprep.mubr.msk.f32.mxu0 (!%p253_p3), %vm3196_vm0, %v3195_v0  ;;  %s3197_s9 = smov (!%p253_p3), 117   ;;  %s3198_s16 = smov (!%p253_p3), 127   ;;  %v2806_v14 = vld [vmem:[%s3624_s3 + $0x8] sm:$0xff] (!%p253_p3)  ;;  %vm862_vm5 = vcmask (!%p253_p3), 883712   ;;  %v362_v21 = vld [vmem:[%s3624_s3] sm:$0xff] (!%p253_p3)  ;;  %vm530_vm6 = vcmask (!%p253_p3), 1031168  }
   0xc   : > { %s3199_s17 = smov (!%p253_p3), 116   ;;  %s3203_s30 = smov (!%p253_p3), 118   ;;  %v2835_v26 = vld [vmem:[%s3624_s3 + $0x78] sm:$0xff] (!%p253_p3)  ;;  %vm945_vm7 = vcmask (!%p253_p3), 875520   ;;  %v2809_v29 = vld [vmem:[%s3624_s3 + $0x10] sm:$0xff] (!%p253_p3)  ;;  %vm613_vm8 = vcmask (!%p253_p3), 965632  }
   0xd   : > { %v2837_v34 = vld [vmem:[%s3624_s3 + $0x80] sm:$0xff] (!%p253_p3)  ;;  %vm1028_vm9 = vcmask (!%p253_p3), 867328   ;;  %v2811_v37 = vld [vmem:[%s3624_s3 + $0x18] sm:$0xff] (!%p253_p3)  ;;  %v2839_v42 = vld [vmem:[%s3624_s3 + $0x88] sm:$0xff] (!%p253_p3)  ;;  %p348_p9 = scmp.lt.s32.totalorder (!%p253_p3), %s3177_s18, 7 }
   0xe   : > { %v2813_v45 = vld [vmem:[%s3624_s3 + $0x20] sm:$0xff] (!%p253_p3)  ;;  %v2841_v49 = vld [vmem:[%s3624_s3 + $0x90] sm:$0xff] (!%p253_p3)  ;;  %v2815_v53 = vld [vmem:[%s3624_s3 + $0x28] sm:$0xff] (!%p253_p3) }
   0xf   : > { %v2843_v57 = vld [vmem:[%s3624_s3 + $0x98] sm:$0xff] (!%p253_p3)  ;;  %v2817_v61 = vld [vmem:[%s3624_s3 + $0x30] sm:$0xff] (!%p253_p3) }
  0x10   : > { %s3638_s19 = smov (!%p315_p5, %s3181_s19), 1  ;;  %s3640_s25 = smov (!%p327_p6, %s324_s25), 9 }
  0x11   : > { %s3271_s26 = smul.u32 20, %s3638_s19  ;;  %s2798_s27 = sshll.u32 %s3640_s25, 1 }
  0x12   : > { %s318_s8 = scalar_select %p317_p7, %s3177_s18, 9 }
  0x13   : > { %s331_s28 = sadd.s32 %s3271_s26, %s2798_s27  ;;  %s3200_s25 = smov 108  }
  0x14   : > { %s2799_s29 = sshll.u32 %s331_s28, 3  ;;  %s2796_s10 = sshll.u32 %s318_s8, 1 }
  0x15   : > { %s333_s7 = scalar_lea.vmem %s3622_s1, %s2799_s29  ;;  %s321_s11 = sadd.s32 %s3271_s26, %s2796_s10 }
  0x16   : > { %v3284_v1 = vld [vmem:[%s333_s7] sm:$0xff]  ;;  %v3289_v2 = vld [vmem:[%s333_s7 + $0x8] sm:$0xff]  ;;  %s2797_s12 = sshll.u32 %s321_s11, 3  ;;  %s335_s27 = sadd.s32 2, %s3177_s18 }
  0x17   : > { %1434 = vrot.lane.b32.xlu0 %v3284_v1, %s3197_s9  ;;  %s323_s15 = scalar_lea.vmem %s3621_s0, %s2797_s12  ;;  %s3201_s28 = smov 126  }
  0x18   : > { %v3297_v3 = vld [vmem:[%s323_s15] sm:$0xff]  ;;  %v367_v4 = vld [vmem:[%s323_s15 + $0x8] sm:$0xff]  ;;  %p338_p8 = scmp.lt.s32.totalorder %s335_s27, 9  ;;  %s3202_s29 = smov 107  }
  0x19   : > { %370 = vrot.lane.b32.xlu1 %v3297_v3, %s3198_s16  ;;  %s3204_s7 = smov 106   ;;  %s3644_s18 = smov (!%p348_p9, %s3177_s18), 7 }
  0x1a   : > { %s3642_s27 = smov (!%p338_p8, %s335_s27), 9 }
  0x1b   : > { %1436 = vrot.lane.b32.xlu0 %v3289_v2, %s3197_s9  ;;  %s2800_s6 = sshll.u32 %s3642_s27, 1 }
  0x1c   : > { %s342_s8 = sadd.s32 %s3271_s26, %s2800_s6  ;;  %s2802_s26 = sshll.u32 %s3638_s19, 3 }
  0x1d   : > { %372 = vrot.lane.b32.xlu1 %v367_v4, %s3198_s16  ;;  %s2801_s10 = sshll.u32 %s342_s8, 3 }
  0x1e   : > { %s344_s13 = scalar_lea.vmem %s3623_s2, %s2801_s10 }
  0x1f   : > { %1516 = vrot.lane.b32.xlu0 %v3284_v1, %s3199_s17  ;;  %v3333_v5 = vld [vmem:[%s344_s13] sm:$0xff]  ;;  %v1922_v6 = vld [vmem:[%s344_s13 + $0x8] sm:$0xff] }
  0x21   : > { %1518 = vrot.lane.b32.xlu1 %v3289_v2, %s3199_s17 }
  0x23   : > { %1598 = vrot.lane.b32.xlu0 %v3284_v1, %s3200_s25 }
  0x25   : > { %1600 = vrot.lane.b32.xlu1 %v3289_v2, %s3200_s25 }
  0x27   : > { %526 = vrot.lane.b32.xlu0 %v3297_v3, %s3201_s28 }
  0x29   : > { %528 = vrot.lane.b32.xlu1 %v367_v4, %s3201_s28 }
  0x2b   : > { %1680 = vrot.lane.b32.xlu0 %v3284_v1, %s3202_s29 }
  0x2d   : > { %1682 = vrot.lane.b32.xlu1 %v3289_v2, %s3202_s29 }
  0x2f   : > { %609 = vrot.lane.b32.xlu0 %v3297_v3, %s3203_s30 }
  0x31   : > { %611 = vrot.lane.b32.xlu1 %v367_v4, %s3203_s30 }
  0x33   : > { %1762 = vrot.lane.b32.xlu0 %v3284_v1, %s3204_s7 }
  0x35   : > { %1764 = vrot.lane.b32.xlu1 %v3289_v2, %s3204_s7 }
  0x37   : > { %692 = vrot.lane.b32.xlu0 %v3297_v3, %s3197_s9 }
  0x39   : > { %694 = vrot.lane.b32.xlu1 %v367_v4, %s3197_s9 }
  0x3b   : > { %775 = vrot.lane.b32.xlu0 %v3297_v3, %s3199_s17 }
  0x3d   : > { %777 = vrot.lane.b32.xlu1 %v367_v4, %s3199_s17 }
  0x3f   : > { %1925 = vrot.lane.b32.xlu0 %v3333_v5, %s3198_s16 }
  0x41   : > { %1927 = vrot.lane.b32.xlu1 %v1922_v6, %s3198_s16 }
  0x43   : > { %858 = vrot.lane.b32.xlu0 %v3297_v3, %s3200_s25 }
  0x45   : > { %860 = vrot.lane.b32.xlu1 %v367_v4, %s3200_s25 }
  0x47   : > { %2007 = vrot.lane.b32.xlu0 %v3333_v5, %s3201_s28 }
  0x49   : > { %2009 = vrot.lane.b32.xlu1 %v1922_v6, %s3201_s28 }
  0x4b   : > { %941 = vrot.lane.b32.xlu0 %v3297_v3, %s3202_s29 }
  0x4d   : > { %943 = vrot.lane.b32.xlu1 %v367_v4, %s3202_s29 }
  0x4f   : > { %2089 = vrot.lane.b32.xlu0 %v3333_v5, %s3203_s30 }
  0x51   : > { %2091 = vrot.lane.b32.xlu1 %v1922_v6, %s3203_s30 }
  0x53   : > { %1024 = vrot.lane.b32.xlu0 %v3297_v3, %s3204_s7 }
  0x55   : > { %1026 = vrot.lane.b32.xlu1 %v367_v4, %s3204_s7 }
  0x57   : > { %2171 = vrot.lane.b32.xlu0 %v3333_v5, %s3197_s9 }
  0x59   : > { %2173 = vrot.lane.b32.xlu1 %v1922_v6, %s3197_s9  ;;  %s351_s9 = sadd.s32 %s2802_s26, %s3644_s18 }
  0x5a   : > { %s2803_s14 = sshll.u32 %s351_s9, 3 }
  0x5b   : > { %2253 = vrot.lane.b32.xlu0 %v3333_v5, %s3199_s17 }
  0x5d   : > { %2255 = vrot.lane.b32.xlu1 %v1922_v6, %s3199_s17  ;;  %s353_s17 = scalar_lea.vmem %s3625_s4, %s2803_s14 }
  0x5f   : > { %1188 = vrot.lane.b32.xlu0 %v3284_v1, %s3198_s16 }
  0x61   : > { %1190 = vrot.lane.b32.xlu1 %v3289_v2, %s3198_s16 }
  0x63   : > { %2335 = vrot.lane.b32.xlu0 %v3333_v5, %s3200_s25 }
  0x65   : > { %2337 = vrot.lane.b32.xlu1 %v1922_v6, %s3200_s25  ;;  %s361_s25 = scalar_lea.vmem %s3626_s5, %s2803_s14 }
  0x67   : > { %1270 = vrot.lane.b32.xlu0 %v3284_v1, %s3201_s28 }
  0x69   : > { %1272 = vrot.lane.b32.xlu1 %v3289_v2, %s3201_s28 }
  0x6b   : > { %2417 = vrot.lane.b32.xlu0 %v3333_v5, %s3202_s29 }
  0x6d   : > { %2419 = vrot.lane.b32.xlu1 %v1922_v6, %s3202_s29 }
  0x6f   : > { %1352 = vrot.lane.b32.xlu0 %v3284_v1, %s3203_s30 }
  0x71   : > { %1354 = vrot.lane.b32.xlu1 %v3289_v2, %s3203_s30 }
  0x73   : > { %2499 = vrot.lane.b32.xlu0 %v3333_v5, %s3204_s7 }
  0x75   : > { %2501 = vrot.lane.b32.xlu1 %v1922_v6, %s3204_s7 }
  0x89   : > { %v1435_v7 = vpop.permute.xlu0 %1434 }
  0x8b   : > { %v371_v11 = vpop.permute.xlu1 %370 }
  0x8d   : > { %v1437_v8 = vpop.permute.xlu0 %1436 }
  0x8e   : > { %v1438_v10 = vsel %vm696_vm1, %v1435_v7, %v1437_v8  ;;  %v2819_v7 = vld [vmem:[%s3624_s3 + $0x38] sm:$0xff] }
  0x8f   : > { %2982 = vmatpush3.msra.mxu0 %v1438_v10  ;;  %v373_v13 = vpop.permute.xlu1 %372 }
  0x90   : > { %2984 = vmatmul.mubr.msk.f32.vlgmr.msra.gmra.mrb[0].mxu0 %vm377_vm2, %v2831_v9  ;;  %2986 = vmatprep.subr.mxu0 %v3195_v0  ;;  %v375_v15 = vsel %vm374_vm3, %v371_v11, %v373_v13  ;;  %v2847_v11 = vld [vmem:[%s3624_s3 + $0xa8] sm:$0xff] }
  0x91   : > { %v1517_v12 = vpop.permute.xlu0 %1516  ;;  %2988 = vmatprep.mubr.msk.f32.mxu0 %vm3196_vm0, %v3195_v0  ;;  %2917 = vmatpush3.msra.mxu1 %v375_v15  ;;  %v2821_v15 = vld [vmem:[%s3624_s3 + $0x40] sm:$0xff] }
  0x92   : > { %2919 = vmatmul.mubr.msk.f32.vlgmr.msra.gmra.mrb[0].mxu1 %vm377_vm2, %v2806_v14  ;;  %2921 = vmatprep.subr.mxu1 %v3195_v0 }
  0x93   : > { %v1519_v17 = vpop.permute.xlu1 %1518  ;;  %2922 = vmatpush3.msra.mxu1 %v3297_v3  ;;  %2923 = vmatprep.mubr.msk.f32.mxu1 %vm3196_vm0, %v3195_v0  ;;  %v2845_v3 = vld [vmem:[%s3624_s3 + $0xa0] sm:$0xff] }
  0x94   : > { %v1520_v19 = vsel %vm779_vm4, %v1517_v12, %v1519_v17  ;;  %2926 = vmatprep.subr.mxu1 %v3195_v0  ;;  %v2849_v17 = vld [vmem:[%s3624_s3 + $0xb0] sm:$0xff] }
  0x95   : > { %v1599_v16 = vpop.permute.xlu0 %1598  ;;  %2987 = vmatpush3.msra.mxu0 %v1520_v19 }
  0x96   : > { %2991 = vmatprep.subr.mxu0 %v3195_v0 }
  0x97   : > { %v1601_v22 = vpop.permute.xlu1 %1600 }
  0x98   : > { %2989 = vmatmul.mubr.msk.f32.vlgmr.msra.gmra.mrb[0].mxu0 %vm377_vm2, %v2833_v18  ;;  %v1602_v23 = vsel %vm862_vm5, %v1599_v16, %v1601_v22 }
  0x99   : > { %v527_v20 = vpop.permute.xlu0 %526  ;;  %2993 = vmatprep.mubr.msk.f32.mxu0 %vm3196_vm0, %v3195_v0  ;;  %2992 = vmatpush3.msra.mxu0 %v1602_v23 }
  0x9a   : > { %2924 = vmatmul.mubr.msk.f32.vlgmr.msra.gmra.mrb[0].mxu1 %vm377_vm2, %v362_v21  ;;  %2996 = vmatprep.subr.mxu0 %v3195_v0  ;;  %v2823_v21 = vld [vmem:[%s3624_s3 + $0x48] sm:$0xff] }
  0x9b   : > { %v529_v25 = vpop.permute.xlu1 %528  ;;  %2928 = vmatprep.mubr.msk.f32.mxu1 %vm3196_vm0, %v3195_v0 }
  0x9c   : > { %v531_v27 = vsel %vm530_vm6, %v527_v20, %v529_v25 }
  0x9d   : > { %v1681_v24 = vpop.permute.xlu0 %1680  ;;  %2927 = vmatpush3.msra.mxu1 %v531_v27  ;;  %v2825_v27 = vld [vmem:[%s3624_s3 + $0x50] sm:$0xff] }
  0x9e   : > { %2931 = vmatprep.subr.mxu1 %v3195_v0 }
  0x9f   : > { %v1683_v30 = vpop.permute.xlu1 %1682 }
  0xa0   : > { %2994 = vmatmul.mubr.msk.f32.vlgmr.msra.gmra.mrb[0].mxu0 %vm377_vm2, %v2835_v26  ;;  %v1684_v31 = vsel %vm945_vm7, %v1681_v24, %v1683_v30  ;;  %v2851_v24 = vld [vmem:[%s3624_s3 + $0xb8] sm:$0xff] }
  0xa1   : > { %v610_v28 = vpop.permute.xlu0 %609  ;;  %2998 = vmatprep.mubr.msk.f32.mxu0 %vm3196_vm0, %v3195_v0  ;;  %2997 = vmatpush3.msra.mxu0 %v1684_v31  ;;  %v2853_v31 = vld [vmem:[%s3624_s3 + $0xc0] sm:$0xff] }
  0xa2   : > { %2929 = vmatmul.mubr.msk.f32.vlgmr.msra.gmra.mrb[0].mxu1 %vm377_vm2, %v2809_v29  ;;  %3001 = vmatprep.subr.mxu0 %v3195_v0 }
  0xa3   : > { %v612_v33 = vpop.permute.xlu1 %611  ;;  %2933 = vmatprep.mubr.msk.f32.mxu1 %vm3196_vm0, %v3195_v0 }
  0xa4   : > { %v614_v35 = vsel %vm613_vm8, %v610_v28, %v612_v33 }
  0xa5   : > { %v1763_v32 = vpop.permute.xlu0 %1762  ;;  %2932 = vmatpush3.msra.mxu1 %v614_v35  ;;  %v2827_v35 = vld [vmem:[%s3624_s3 + $0x58] sm:$0xff] }
  0xa6   : > { %2936 = vmatprep.subr.mxu1 %v3195_v0 }
  0xa7   : > { %v1765_v38 = vpop.permute.xlu1 %1764 }
  0xa8   : > { %2999 = vmatmul.mubr.msk.f32.vlgmr.msra.gmra.mrb[0].mxu0 %vm377_vm2, %v2837_v34  ;;  %v1766_v39 = vsel %vm1028_vm9, %v1763_v32, %v1765_v38 }
  0xa9   : > { %v693_v36 = vpop.permute.xlu0 %692  ;;  %3003 = vmatprep.mubr.msk.f32.mxu0 %vm3196_vm0, %v3195_v0  ;;  %3002 = vmatpush3.msra.mxu0 %v1766_v39  ;;  %v2855_v39 = vld [vmem:[%s3624_s3 + $0xc8] sm:$0xff] }
  0xaa   : > { %2934 = vmatmul.mubr.msk.f32.vlgmr.msra.gmra.mrb[0].mxu1 %vm377_vm2, %v2811_v37  ;;  %3006 = vmatprep.subr.mxu0 %v3195_v0 }
  0xab   : > { %v695_v41 = vpop.permute.xlu1 %694  ;;  %2938 = vmatprep.mubr.msk.f32.mxu1 %vm3196_vm0, %v3195_v0 }
  0xac   : > { %v697_v43 = vsel %vm696_vm1, %v693_v36, %v695_v41  ;;  %v2829_v41 = vld [vmem:[%s3624_s3 + $0x60] sm:$0xff] }
  0xad   : > { %v776_v40 = vpop.permute.xlu0 %775  ;;  %2937 = vmatpush3.msra.mxu1 %v697_v43  ;;  %v2580_v43 = vlaneseq }
  0xae   : > { %2941 = vmatprep.subr.mxu1 %v3195_v0 }
  0xaf   : > { %v778_v46 = vpop.permute.xlu1 %777 }
  0xb0   : > { %3004 = vmatmul.mubr.msk.f32.vlgmr.msra.gmra.mrb[0].mxu0 %vm377_vm2, %v2839_v42  ;;  %v780_v47 = vsel %vm779_vm4, %v776_v40, %v778_v46  ;;  %v2857_v42 = vld [vmem:[%s3624_s3 + $0xd0] sm:$0xff] }
  0xb1   : > { %v1926_v44 = vpop.permute.xlu0 %1925  ;;  %3007 = vmatpush3.msra.mxu0 %v3333_v5  ;;  %3008 = vmatprep.mubr.msk.f32.mxu0 %vm3196_vm0, %v3195_v0 }
  0xb2   : > { %3011 = vmatprep.subr.mxu0 %v3195_v0  ;;  %2939 = vmatmul.mubr.msk.f32.vlgmr.msra.gmra.mrb[0].mxu1 %vm377_vm2, %v2813_v45 }
  0xb3   : > { %2942 = vmatpush3.msra.mxu1 %v780_v47  ;;  %2943 = vmatprep.mubr.msk.f32.mxu1 %vm3196_vm0, %v3195_v0  ;;  %v1928_v50 = vpop.permute.xlu1 %1927 }
  0xb4   : > { %v1929_v51 = vsel %vm374_vm3, %v1926_v44, %v1928_v50  ;;  %2946 = vmatprep.subr.mxu1 %v3195_v0  ;;  %v2581_v44 = vand.u32 127, %v2580_v43 }
  0xb5   : > { %v859_v48 = vpop.permute.xlu0 %858 }
  0xb6   : > { %v3592_v45 = vmul.u32.u64.low 3435973837, %v2581_v44  ;;  %v3593_v46 = vmul.u32.u64.high 3435973837, %v2581_v44, %v3592_v45  ;;  %vm2599_vm14 = vcmp.lt.s32.totalorder %v2581_v44, 80 }
  0xb7   : > { %v861_v54 = vpop.permute.xlu1 %860 }
  0xb8   : > { %3009 = vmatmul.mubr.msk.f32.vlgmr.msra.gmra.mrb[0].mxu0 %vm377_vm2, %v2841_v49  ;;  %v863_v55 = vsel %vm862_vm5, %v859_v48, %v861_v54  ;;  %v2588_v47 = vshrl.u32 %v3593_v46, 3 }
  0xb9   : > { %v2008_v52 = vpop.permute.xlu0 %2007  ;;  %3012 = vmatpush3.msra.mxu0 %v1929_v51  ;;  %3013 = vmatprep.mubr.msk.f32.mxu0 %vm3196_vm0, %v3195_v0 }
  0xba   : > { %3016 = vmatprep.subr.mxu0 %v3195_v0  ;;  %2944 = vmatmul.mubr.msk.f32.vlgmr.msra.gmra.mrb[0].mxu1 %vm377_vm2, %v2815_v53  ;;  %v2589_v48 = vmul.u32 10, %v2588_v47 }
  0xbb   : > { %2947 = vmatpush3.msra.mxu1 %v863_v55  ;;  %2948 = vmatprep.mubr.msk.f32.mxu1 %vm3196_vm0, %v3195_v0  ;;  %v2010_v58 = vpop.permute.xlu1 %2009 }
  0xbc   : > { %v2011_v59 = vsel %vm530_vm6, %v2008_v52, %v2010_v58  ;;  %2951 = vmatprep.subr.mxu1 %v3195_v0  ;;  %v2590_v49 = vsub.s32 %v2581_v44, %v2589_v48 }
  0xbd   : > { %v942_v56 = vpop.permute.xlu0 %941 }
  0xbe   : > { %vm2593_vm10 = vcmp.ne.s32.totalorder %v2590_v49, 0  ;;  %vm2594_vm11 = vcmp.lt.s32.totalorder %v2590_v49, 0  ;;  %v2596_v50 = vadd.s32 10, %v2590_v49 }
  0xbf   : > { %v944_v62 = vpop.permute.xlu1 %943  ;;  %vm2595_vm12 = vmand %vm2594_vm11, %vm2593_vm10 }
  0xc0   : > { %3014 = vmatmul.mubr.msk.f32.vlgmr.msra.gmra.mrb[0].mxu0 %vm377_vm2, %v2843_v57  ;;  %v946_v63 = vsel %vm945_vm7, %v942_v56, %v944_v62  ;;  %v2597_v51 = vsel %vm2595_vm12, %v2596_v50, %v2590_v49 }
  0xc1   : > { %v2090_v60 = vpop.permute.xlu0 %2089  ;;  %3017 = vmatpush3.msra.mxu0 %v2011_v59  ;;  %3018 = vmatprep.mubr.msk.f32.mxu0 %vm3196_vm0, %v3195_v0  ;;  %vm2598_vm13 = vcmp.lt.s32.totalorder %v2597_v51, 8 }
  0xc2   : > { %3021 = vmatprep.subr.mxu0 %v3195_v0  ;;  %2949 = vmatmul.mubr.msk.f32.vlgmr.msra.gmra.mrb[0].mxu1 %vm377_vm2, %v2817_v61  ;;  %vm2600_vm15 = vmand %vm2598_vm13, %vm2599_vm14 }
  0xc3   : > { %2952 = vmatpush3.msra.mxu1 %v946_v63  ;;  %2953 = vmatprep.mubr.msk.f32.mxu1 %vm3196_vm0, %v3195_v0  ;;  %v2092_v4 = vpop.permute.xlu1 %2091  ;;  %v2859_v55 = vsel %vm2600_vm15, 1.0, %v3195_v0 }
  0xc4   : > { %v2093_v5 = vsel %vm613_vm8, %v2090_v60, %v2092_v4  ;;  %2956 = vmatprep.subr.mxu1 %v3195_v0 }
  0xc5   : > { %v1025_v2 = vpop.permute.xlu0 %1024 }
  0xc7   : > { %v1027_v8 = vpop.permute.xlu1 %1026 }
  0xc8   : > { %3019 = vmatmul.mubr.msk.f32.vlgmr.msra.gmra.mrb[0].mxu0 %vm377_vm2, %v2845_v3  ;;  %v1029_v9 = vsel %vm1028_vm9, %v1025_v2, %v1027_v8 }
  0xc9   : > { %v2172_v6 = vpop.permute.xlu0 %2171  ;;  %3022 = vmatpush3.msra.mxu0 %v2093_v5  ;;  %3023 = vmatprep.mubr.msk.f32.mxu0 %vm3196_vm0, %v3195_v0 }
  0xca   : > { %3026 = vmatprep.subr.mxu0 %v3195_v0  ;;  %2954 = vmatmul.mubr.msk.f32.vlgmr.msra.gmra.mrb[0].mxu1 %vm377_vm2, %v2819_v7 }
  0xcb   : > { %2957 = vmatpush3.msra.mxu1 %v1029_v9  ;;  %2958 = vmatprep.mubr.msk.f32.mxu1 %vm3196_vm0, %v3195_v0  ;;  %v2174_v12 = vpop.permute.xlu1 %2173 }
  0xcc   : > { %v2175_v13 = vsel %vm696_vm1, %v2172_v6, %v2174_v12  ;;  %2961 = vmatprep.subr.mxu1 %v3195_v0  ;;  %vm2611_vm1 = vcmask 15368  }
  0xcd   : > { %v2254_v10 = vpop.permute.xlu0 %2253 }
  0xcf   : > { %v2256_v16 = vpop.permute.xlu1 %2255 }
  0xd0   : > { %3024 = vmatmul.mubr.msk.f32.vlgmr.msra.gmra.mrb[0].mxu0 %vm377_vm2, %v2847_v11  ;;  %v2257_v20 = vsel %vm779_vm4, %v2254_v10, %v2256_v16 }
  0xd1   : > { %v1189_v14 = vpop.permute.xlu0 %1188  ;;  %3027 = vmatpush3.msra.mxu0 %v2175_v13  ;;  %3028 = vmatprep.mubr.msk.f32.mxu0 %vm3196_vm0, %v3195_v0 }
  0xd2   : > { %3031 = vmatprep.subr.mxu0 %v3195_v0  ;;  %2959 = vmatmul.mubr.msk.f32.vlgmr.msra.gmra.mrb[0].mxu1 %vm377_vm2, %v2821_v15 }
  0xd3   : > { %2962 = vmatpush3.msra.mxu1 %v3284_v1  ;;  %2963 = vmatprep.mubr.msk.f32.mxu1 %vm3196_vm0, %v3195_v0  ;;  %v1191_v18 = vpop.permute.xlu1 %1190 }
  0xd4   : > { %2966 = vmatprep.subr.mxu1 %v3195_v0  ;;  %v1192_v22 = vsel %vm374_vm3, %v1189_v14, %v1191_v18 }
  0xd5   : > { %v2336_v19 = vpop.permute.xlu0 %2335 }
  0xd7   : > { %v2338_v1 = vpop.permute.xlu1 %2337 }
  0xd8   : > { %3029 = vmatmul.mubr.msk.f32.vlgmr.msra.gmra.mrb[0].mxu0 %vm377_vm2, %v2849_v17  ;;  %v2339_v26 = vsel %vm862_vm5, %v2336_v19, %v2338_v1 }
  0xd9   : > { %3032 = vmatpush3.msra.mxu0 %v2257_v20  ;;  %3033 = vmatprep.mubr.msk.f32.mxu0 %vm3196_vm0, %v3195_v0  ;;  %v1271_v23 = vpop.permute.xlu0 %1270 }
  0xda   : > { %3036 = vmatprep.subr.mxu0 %v3195_v0  ;;  %2964 = vmatmul.mubr.msk.f32.vlgmr.msra.gmra.mrb[0].mxu1 %vm377_vm2, %v2823_v21 }
  0xdb   : > { %2967 = vmatpush3.msra.mxu1 %v1192_v22  ;;  %2968 = vmatprep.mubr.msk.f32.mxu1 %vm3196_vm0, %v3195_v0  ;;  %v1273_v25 = vpop.permute.xlu1 %1272 }
  0xdc   : > { %2971 = vmatprep.subr.mxu1 %v3195_v0  ;;  %v1274_v30 = vsel %vm530_vm6, %v1271_v23, %v1273_v25 }
  0xdd   : > { %v2418_v28 = vpop.permute.xlu0 %2417 }
  0xdf   : > { %v2420_v29 = vpop.permute.xlu1 %2419 }
  0xe0   : > { %3034 = vmatmul.mubr.msk.f32.vlgmr.msra.gmra.mrb[0].mxu0 %vm377_vm2, %v2851_v24  ;;  %v2421_v32 = vsel %vm945_vm7, %v2418_v28, %v2420_v29 }
  0xe1   : > { %3037 = vmatpush3.msra.mxu0 %v2339_v26  ;;  %3038 = vmatprep.mubr.msk.f32.mxu0 %vm3196_vm0, %v3195_v0  ;;  %v1353_v33 = vpop.permute.xlu0 %1352 }
  0xe2   : > { %3041 = vmatprep.subr.mxu0 %v3195_v0  ;;  %2969 = vmatmul.mubr.msk.f32.vlgmr.msra.gmra.mrb[0].mxu1 %vm377_vm2, %v2825_v27 }
  0xe3   : > { %2972 = vmatpush3.msra.mxu1 %v1274_v30  ;;  %2973 = vmatprep.mubr.msk.f32.mxu1 %vm3196_vm0, %v3195_v0  ;;  %v1355_v34 = vpop.permute.xlu1 %1354 }
  0xe4   : > { %2976 = vmatprep.subr.mxu1 %v3195_v0  ;;  %v1356_v36 = vsel %vm613_vm8, %v1353_v33, %v1355_v34 }
  0xe5   : > { %v2500_v37 = vpop.permute.xlu0 %2499 }
  0xe7   : > { %v2502_v38 = vpop.permute.xlu1 %2501 }
  0xe8   : > { %3039 = vmatmul.mubr.msk.f32.vlgmr.msra.gmra.mrb[0].mxu0 %vm377_vm2, %v2853_v31  ;;  %v2503_v40 = vsel %vm1028_vm9, %v2500_v37, %v2502_v38 }
  0xe9   : > { %3042 = vmatpush3.msra.mxu0 %v2421_v32  ;;  %3043 = vmatprep.mubr.msk.f32.mxu0 %vm3196_vm0, %v3195_v0 }
  0xea   : > { %3046 = vmatprep.subr.mxu0 %v3195_v0  ;;  %2974 = vmatmul.mubr.msk.f32.vlgmr.msra.gmra.mrb[0].mxu1 %vm377_vm2, %v2827_v35 }
  0xeb   : > { %2977 = vmatpush3.msra.mxu1 %v1356_v36  ;;  %2978 = vmatprep.mubr.msk.f32.mxu1 %vm3196_vm0, %v3195_v0 }
  0xf0   : > { %3044 = vmatmul.mubr.msk.f32.vlgmr.msra.gmra.mrb[0].mxu0 %vm377_vm2, %v2855_v39 }
  0xf1   : > { %3047 = vmatpush3.msra.mxu0 %v2503_v40  ;;  %3048 = vmatprep.mubr.msk.f32.mxu0 %vm3196_vm0, %v3195_v0  ;;  %vm2606_vm0 = vcmask 7168  }
  0xf2   : > { %2979 = vmatmul.mubr.msk.f32.vlgmr.msra.gmra.mrb[0].mxu1 %vm377_vm2, %v2829_v41 }
  0xf8   : > { %3049 = vmatmul.mubr.msk.f32.vlgmr.msra.gmra.mrb[0].mxu0 %vm377_vm2, %v2857_v42 }
 0x1c5   : > { %v1427_v52 = vpop.f32.mrb[0].mxu1 }
 0x1c6   : > { %v2980_v53 = vpop.f32.mrb[1].mxu1 }
 0x1cb   : > { %v2574_v54 = vpop.f32.mrb[0].mxu0 }
 0x1cc   : > { %v3051_v56 = vadd.f32 %v2574_v54, %v1427_v52  ;;  %v3050_v57 = vpop.f32.mrb[1].mxu0 }
 0x1ce   : > { %2579 = vst [vmem:[%s353_s17] sm:$0xff] %v3051_v56  ;;  %v2603_v58 = vmul.f32 %v3051_v56, %v2859_v55 }
 0x1d0   : > { %2604 = vadd.xlane.f32.xlu0 %v2603_v58  ;;  %v2608_v59 = vmul.f32 %v3051_v56, %v2603_v58 }
 0x1d2   : > { %2609 = vadd.xlane.f32.xlu1 %v2608_v59 }
 0x25d   : > { %v2605_v60 = vpop.xlane.xlu0 %2604 }
 0x25e   : > { %2607 = vst.msk [vmem:[%s361_s25] sm:$0xff] %vm2606_vm0, %v2605_v60 }
 0x25f   : > { %v2610_v61 = vpop.xlane.xlu1 %2609 }
 0x260   : > { %2612 = vst.msk [vmem:[%s361_s25] sm:$0xff] %vm2611_vm1, %v2610_v61 }
 0x261 PF: > { %s16_s22 = sadd.s32 1, %s3193_s22   ;;  %s3627_s18 = smov %s3185_s20 }
 0x262   : > { %p13_p10 = scmp.ge.s32.totalorder %s16_s22, 18   ;;  %s3628_s19 = smov %s3189_s21 }
 0x263   : > { %s3629_s20 = smov %s3632_s23  ;;  %s3630_s21 = smov %s3636_s24 }
 0x264   :  { %15 = sbr.rel (!%p13_p10) target bundleno = 3 (0x3), region = 110 }

// kernel: down_forward.7
= control target key start
LH: loop header
LB: loop body
LE: loop exit
PB: predicated region body
PF: predicated region fallthrough
CT: control target
= control target key end

     0   :  { %s368_s12 = smov 0   ;;  %s402_s0 = inlined_call_operand.vmem [shape: f32[16,8,128], index: 0, kind: input, shape index: {}]   ;;  %s403_s1 = inlined_call_operand.vmem [shape: f32[1,8,1], index: 1, kind: input, shape index: {}]   ;;  %s404_s2 = inlined_call_operand.vmem [shape: f32[1,8,1], index: 2, kind: input, shape index: {}]   ;;  %s405_s3 = inlined_call_operand.vmem [shape: f32[16,8,128], index: 3, kind: output, shape index: {}]  }
   0x1 LB: > { %s313_s13 = sadd.s32 4294967295, %s344_s12   ;;  %p317_p0 = scmp.ge.s32.totalorder %s344_s12, 1  ;;  %s344_s12 = sphi %s368_s12, %s13_s12  }
   0x2   : > { %p138_p1 = scmp.lt.s32.totalorder %s344_s12, 3 }
   0x4   : > { %p139_p2 = pnand %p317_p0, %p138_p1 }
   0x5   : > { %v205_v0 = vld [vmem:[%s403_s1] sm:$0xff] (!%p139_p2)  ;;  %v346_v1 = vmov (!%p139_p2), 0   ;;  %v174_v3 = vlaneseq (!%p139_p2)  ;;  %s318_s18 = sshll.u32 (!%p139_p2), %s313_s13, 3  ;;  %v347_v21 = vmov (!%p139_p2), 0.0  }
   0x6   : > { %142 = sbr.rel (%p139_p2) target bundleno = 149 (0x95), region = 32  ;;  %337 = vset.pattern.permute.xlu0 (!%p139_p2), %v346_v1  ;;  %v219_v2 = vld [vmem:[%s404_s2] sm:$0xff] (!%p139_p2)  ;;  %p163_p3 = scmp.lt.s32.totalorder (!%p139_p2), %s318_s18, 15 }
   0x7   : > { %208 = vperm.xlu0 (!%p139_p2), %337, %v205_v0   ;;  %v175_v4 = vand.u32 (!%p139_p2), 127, %v174_v3 }
   0x9   : > { %v382_v5 = vmul.u32.u64.low (!%p139_p2), 3435973837, %v175_v4  ;;  %v383_v6 = vmul.u32.u64.high 3435973837, %v175_v4, %v382_v5  ;;  %vm193_vm4 = vcmp.lt.s32.totalorder (!%p139_p2), %v175_v4, 80 }
   0xb   : > { %222 = vperm.xlu0 (!%p139_p2), %337, %v219_v2   ;;  %v182_v7 = vshrl.u32 (!%p139_p2), %v383_v6, 3 }
   0xd   : > { %v183_v8 = vmul.u32 10, %v182_v7  ;;  %s407_s18 = smov (!%p163_p3, %s318_s18), 15 }
   0xe   : > { %s319_s19 = sshll.u32 %s407_s18, 3 }
   0xf   : > { %v184_v9 = vsub.s32 %v175_v4, %v183_v8  ;;  %s166_s22 = scalar_lea.vmem %s402_s0, %s319_s19  ;;  %s172_s25 = scalar_lea.vmem %s405_s3, %s319_s19 }
  0x10   : > { %v197_v12 = vld [vmem:[%s166_s22] sm:$0xff]  ;;  %v198_v13 = vld [vmem:[%s166_s22 + $0x8] sm:$0xff]  ;;  %v199_v15 = vld [vmem:[%s166_s22 + $0x10] sm:$0xff] }
  0x11   : > { %vm187_vm0 = vcmp.ne.s32.totalorder %v184_v9, 0  ;;  %vm188_vm1 = vcmp.lt.s32.totalorder %v184_v9, 0  ;;  %v190_v10 = vadd.s32 10, %v184_v9  ;;  %v200_v16 = vld [vmem:[%s166_s22 + $0x18] sm:$0xff]  ;;  %v201_v17 = vld [vmem:[%s166_s22 + $0x20] sm:$0xff]  ;;  %v202_v18 = vld [vmem:[%s166_s22 + $0x28] sm:$0xff] }
  0x12   : > { %vm189_vm2 = vmand %vm188_vm1, %vm187_vm0  ;;  %v203_v19 = vld [vmem:[%s166_s22 + $0x30] sm:$0xff]  ;;  %v204_v20 = vld [vmem:[%s166_s22 + $0x38] sm:$0xff] }
  0x13   : > { %v191_v11 = vsel %vm189_vm2, %v190_v10, %v184_v9 }
  0x14   : > { %vm192_vm3 = vcmp.lt.s32.totalorder %v191_v11, 8 }
  0x15   : > { %vm194_vm5 = vmand %vm192_vm3, %vm193_vm4 }
  0x16   : > { %v322_v22 = vsel %vm194_vm5, 1.0, %v347_v21 }
  0x86   : > { %v209_v14 = vpop.permute.xlu0 %208 }
  0x87   : > { %v211_v23 = vmul.f32 %v209_v14, %v197_v12  ;;  %v212_v24 = vmul.f32 %v209_v14, %v198_v13  ;;  %v213_v25 = vmul.f32 %v209_v14, %v199_v15  ;;  %v214_v26 = vmul.f32 %v209_v14, %v200_v16 }
  0x88   : > { %v215_v28 = vmul.f32 %v209_v14, %v201_v17  ;;  %v216_v29 = vmul.f32 %v209_v14, %v202_v18  ;;  %v217_v30 = vmul.f32 %v209_v14, %v203_v19  ;;  %v218_v31 = vmul.f32 %v209_v14, %v204_v20 }
  0x8a   : > { %v223_v27 = vpop.permute.xlu0 %222 }
  0x8b   : > { %v225_v32 = vadd.f32 %v223_v27, %v211_v23  ;;  %v226_v33 = vadd.f32 %v223_v27, %v212_v24  ;;  %v227_v34 = vadd.f32 %v223_v27, %v213_v25  ;;  %v228_v35 = vadd.f32 %v223_v27, %v214_v26 }
  0x8c   : > { %v229_v36 = vadd.f32 %v223_v27, %v215_v28  ;;  %v230_v37 = vadd.f32 %v223_v27, %v216_v29  ;;  %v231_v38 = vadd.f32 %v223_v27, %v217_v30  ;;  %v232_v39 = vadd.f32 %v223_v27, %v218_v31 }
  0x8d   : > { %v233_v40 = vmax.f32 %v225_v32, 0.0  ;;  %v234_v41 = vmax.f32 %v226_v33, 0.0  ;;  %v235_v42 = vmax.f32 %v227_v34, 0.0  ;;  %v236_v43 = vmax.f32 %v228_v35, 0.0 }
  0x8e   : > { %v237_v44 = vmax.f32 %v229_v36, 0.0  ;;  %v238_v45 = vmax.f32 %v230_v37, 0.0  ;;  %v239_v46 = vmax.f32 %v231_v38, 0.0  ;;  %v240_v47 = vmax.f32 %v232_v39, 0.0 }
  0x8f   : > { %v241_v48 = vmul.f32 %v322_v22, %v233_v40  ;;  %v242_v49 = vmul.f32 %v322_v22, %v234_v41  ;;  %v243_v50 = vmul.f32 %v322_v22, %v235_v42  ;;  %v244_v51 = vmul.f32 %v322_v22, %v236_v43 }
  0x90   : > { %v245_v52 = vmul.f32 %v322_v22, %v237_v44  ;;  %v246_v53 = vmul.f32 %v322_v22, %v238_v45  ;;  %v247_v54 = vmul.f32 %v322_v22, %v239_v46  ;;  %v248_v55 = vmul.f32 %v322_v22, %v240_v47 }
  0x91   : > { %249 = vst [vmem:[%s172_s25] sm:$0xff] %v241_v48  ;;  %250 = vst [vmem:[%s172_s25 + $0x8] sm:$0xff] %v242_v49 }
  0x92   : > { %251 = vst [vmem:[%s172_s25 + $0x10] sm:$0xff] %v243_v50  ;;  %252 = vst [vmem:[%s172_s25 + $0x18] sm:$0xff] %v244_v51 }
  0x93   : > { %253 = vst [vmem:[%s172_s25 + $0x20] sm:$0xff] %v245_v52  ;;  %254 = vst [vmem:[%s172_s25 + $0x28] sm:$0xff] %v246_v53 }
  0x94   : > { %255 = vst [vmem:[%s172_s25 + $0x30] sm:$0xff] %v247_v54  ;;  %256 = vst [vmem:[%s172_s25 + $0x38] sm:$0xff] %v248_v55 }
  0x95 PF: > { %s13_s12 = sadd.s32 1, %s344_s12  }
  0x96   : > { %p10_p4 = scmp.ge.s32.totalorder %s13_s12, 4  }
  0x98   :  { %12 = sbr.rel (!%p10_p4) target bundleno = 1 (0x1), region = 62 }

</bundles_post_ra>
